<compile_context>
chip_gen: v7x
topology: tpu7x:2x2x1
jax: 0.10.0
libtpu: 0.0.40
codegen_flags: <defaults>
</compile_context>

<pallas_src>
import jax
import jax.numpy as jnp
from jax import lax
from jax.experimental import pallas as pl
from jax.experimental.pallas import tpu as pltpu


def _round_up(x, m):
    return (x + m - 1) // m * m


# --------------------- generic tiled GEMM + bias (lane-dense) ---------------------
def _matmul_bias_kernel(a_ref, b_ref, bias_ref, o_ref, acc_ref):
    @pl.when(pl.program_id(2) == 0)
    def _():
        acc_ref[...] = jnp.zeros_like(acc_ref)

    acc_ref[...] += jnp.dot(a_ref[...], b_ref[...],
                            preferred_element_type=jnp.float32)

    @pl.when(pl.program_id(2) == pl.num_programs(2) - 1)
    def _():
        o_ref[...] = (acc_ref[...] + bias_ref[...]).astype(o_ref.dtype)


def matmul_bias(a, b, bias, out_dtype=jnp.float32, tm=256, tn=512, tk=512):
    """(M, K) @ (K, N) + bias(1, N), padded to TPU-friendly tiles, sliced back."""
    M, K = a.shape
    K2, N = b.shape
    assert K == K2 and bias.shape == (1, N)
    Mp, Np, Kp = _round_up(M, 8), _round_up(N, 128), _round_up(K, 128)
    tm, tn, tk = min(tm, Mp), min(tn, Np), min(tk, Kp)
    Mp, Np, Kp = _round_up(Mp, tm), _round_up(Np, tn), _round_up(Kp, tk)
    a_p = jnp.pad(a, ((0, Mp - M), (0, Kp - K)))
    b_p = jnp.pad(b, ((0, Kp - K), (0, Np - N)))
    bias_p = jnp.pad(bias, ((0, 0), (0, Np - N)))
    out = pl.pallas_call(
        _matmul_bias_kernel,
        out_shape=jax.ShapeDtypeStruct((Mp, Np), out_dtype),
        grid_spec=pltpu.PrefetchScalarGridSpec(
            num_scalar_prefetch=0,
            grid=(Mp // tm, Np // tn, Kp // tk),
            in_specs=[
                pl.BlockSpec((tm, tk), lambda i, j, k: (i, k)),
                pl.BlockSpec((tk, tn), lambda i, j, k: (k, j)),
                pl.BlockSpec((1, tn), lambda i, j, k: (0, j)),
            ],
            out_specs=pl.BlockSpec((tm, tn), lambda i, j, k: (i, j)),
            scratch_shapes=[pltpu.VMEM((tm, tn), jnp.float32)],
        ),
        compiler_params=pltpu.CompilerParams(
            dimension_semantics=("parallel", "parallel", "arbitrary")),
    )(a_p, b_p, bias_p)
    return out[:M, :N]


# ----------------------------- LSTM recurrence kernel -----------------------------
def _lstm_recurrence_kernel(gx_ref, whh_hbm, y_ref, h_sc, c_sc, w_sc, copy_sem):
    """One time-CHUNK of a single LSTM layer.

    gx_ref:  (TT, B, 4*Hp)  precomputed x@W_ih^T + b for this chunk (gate-padded)
    whh_hbm: (Hp, 4*Hp)     W_hh^T in HBM (copied once into w_sc at chunk 0)
    y_ref:   (TT, B, Hp)    hidden-state outputs for this chunk
    h_sc/c_sc: (B, Hp) f32  state carried across chunks
    """
    chunk = pl.program_id(0)

    @pl.when(chunk == 0)
    def _():
        cp = pltpu.make_async_copy(whh_hbm, w_sc, copy_sem)
        cp.start()
        cp.wait()
        h_sc[...] = jnp.zeros_like(h_sc)
        c_sc[...] = jnp.zeros_like(c_sc)

    tt = y_ref.shape[0]
    hp = h_sc.shape[-1]

    def step(s, carry):
        h, c = carry
        gates = gx_ref[s] + jnp.dot(h, w_sc[...],
                                    preferred_element_type=jnp.float32)
        # Lane-aligned gate slices (Hp is a multiple of 128).
        i_g = jax.nn.sigmoid(gates[:, 0 * hp:1 * hp])
        f_g = jax.nn.sigmoid(gates[:, 1 * hp:2 * hp])
        g_g = jnp.tanh(gates[:, 2 * hp:3 * hp])
        o_g = jax.nn.sigmoid(gates[:, 3 * hp:4 * hp])
        c_new = f_g * c + i_g * g_g
        h_new = o_g * jnp.tanh(c_new)
        y_ref[s] = h_new.astype(y_ref.dtype)
        return (h_new, c_new)

    h_fin, c_fin = lax.fori_loop(0, tt, step, (h_sc[...], c_sc[...]),
                                 unroll=True)
    h_sc[...] = h_fin   # written once per chunk, not once per step
    c_sc[...] = c_fin


def lstm_recurrence(gates_x, w_hh_t, time_chunk=16):
    """gates_x: (T, B, 4*Hp) f32, w_hh_t: (Hp, 4*Hp) -> (T, B, Hp) f32."""
    T, B, G = gates_x.shape
    Hp = G // 4
    tt = max(1, min(time_chunk, T))
    Tp = _round_up(T, tt)
    if Tp != T:
        gates_x = jnp.pad(gates_x, ((0, Tp - T), (0, 0), (0, 0)))
    y = pl.pallas_call(
        _lstm_recurrence_kernel,
        out_shape=jax.ShapeDtypeStruct((Tp, B, Hp), jnp.float32),
        grid_spec=pltpu.PrefetchScalarGridSpec(
            num_scalar_prefetch=0,
            grid=(Tp // tt,),
            in_specs=[
                pl.BlockSpec((tt, B, G), lambda c: (c, 0, 0)),
                pl.BlockSpec(memory_space=pl.ANY),   # W_hh^T: single copy into VMEM
            ],
            out_specs=pl.BlockSpec((tt, B, Hp), lambda c: (c, 0, 0)),
            scratch_shapes=[
                pltpu.VMEM((B, Hp), jnp.float32),      # h state
                pltpu.VMEM((B, Hp), jnp.float32),      # c state
                pltpu.VMEM((Hp, 4 * Hp), jnp.float32),  # resident W_hh^T
                pltpu.SemaphoreType.DMA,
            ],
        ),
        compiler_params=pltpu.CompilerParams(
            dimension_semantics=("arbitrary",)),
    )(gates_x, w_hh_t)
    return y[:T]


# ------------------------------- parameters & packing ------------------------------
def init_lstm_params_raw(key, input_size, hidden_size, num_layers, out_features):
    """PyTorch-layout parameters (uniform init, nn.LSTM-like scale)."""
    raw = {"layers": []}
    k = 1.0 / jnp.sqrt(hidden_size)
    for layer in range(num_layers):
        d_in = input_size if layer == 0 else hidden_size
        key, k1, k2, k3, k4 = jax.random.split(key, 5)
        raw["layers"].append({
            "w_ih": jax.random.uniform(k1, (4 * hidden_size, d_in), jnp.float32, -k, k),
            "w_hh": jax.random.uniform(k2, (4 * hidden_size, hidden_size), jnp.float32, -k, k),
            "b_ih": jax.random.uniform(k3, (4 * hidden_size,), jnp.float32, -k, k),
            "b_hh": jax.random.uniform(k4, (4 * hidden_size,), jnp.float32, -k, k),
        })
    key, k5, k6 = jax.random.split(key, 3)
    raw["linear_w"] = jax.random.uniform(k5, (out_features, hidden_size), jnp.float32, -k, k)
    raw["linear_b"] = jax.random.uniform(k6, (out_features,), jnp.float32, -k, k)
    return raw


def pack_params(raw):
    """Transpose + pad weights into the lane-aligned kernel layout.

    Hidden dim is padded to Hp (multiple of 128); each gate gets its own Hp-wide
    column block. Zero padding keeps the padded h/c lanes exactly zero.
    """
    packed = {"layers": []}
    for idx, lp in enumerate(raw["layers"]):
        w_ih, w_hh = lp["w_ih"], lp["w_hh"]
        bias = lp["b_ih"] + lp["b_hh"]
        H = w_hh.shape[1]
        d_in = w_ih.shape[1]
        Hp = _round_up(H, 128)
        in_rows = d_in if idx == 0 else Hp      # layers > 0 consume the padded h
        w_ih_t = jnp.zeros((in_rows, 4 * Hp), jnp.float32)
        w_hh_t = jnp.zeros((Hp, 4 * Hp), jnp.float32)
        b_p = jnp.zeros((1, 4 * Hp), jnp.float32)
        for g in range(4):
            w_ih_t = w_ih_t.at[:d_in, g * Hp:g * Hp + H].set(w_ih[g * H:(g + 1) * H, :].T)
            w_hh_t = w_hh_t.at[:H, g * Hp:g * Hp + H].set(w_hh[g * H:(g + 1) * H, :].T)
            b_p = b_p.at[0, g * Hp:g * Hp + H].set(bias[g * H:(g + 1) * H])
        packed["layers"].append({"w_ih_t": w_ih_t, "w_hh_t": w_hh_t, "bias": b_p})
    w_lin = raw["linear_w"]                      # (F, H)
    H = w_lin.shape[1]
    Hp = _round_up(H, 128)
    packed["linear_w_t"] = jnp.zeros((Hp, w_lin.shape[0]), jnp.float32).at[:H, :].set(w_lin.T)
    packed["linear_b"] = raw["linear_b"][None, :]
    return packed


# ------------------------------------ forward --------------------------------------
@jax.jit
def lstm_forward(params, x):
    """x: (B, T, input_size) batch_first -> (B, T, out_features)."""
    B, T, _ = x.shape
    act = jnp.transpose(x, (1, 0, 2))            # time-major (T, B, D), once for the net
    for lp in params["layers"]:
        d_in = act.shape[-1]
        # Hoisted input projection: one big MXU GEMM over T*B rows.
        gx = matmul_bias(act.reshape(T * B, d_in), lp["w_ih_t"], lp["bias"])
        act = lstm_recurrence(gx.reshape(T, B, -1), lp["w_hh_t"])
    Hp = act.shape[-1]
    # Linear head as one lane-dense GEMM over T*B rows (F padded to 128 inside).
    y = matmul_bias(act.reshape(T * B, Hp), params["linear_w_t"], params["linear_b"])
    F = params["linear_b"].shape[-1]
    return jnp.transpose(y.reshape(T, B, F), (1, 0, 2))


# ------------------------------ pure-JAX reference ----------------------------------
def lstm_forward_ref(raw, x):
    B = x.shape[0]
    act = jnp.transpose(x, (1, 0, 2))
    for lp in raw["layers"]:
        w_ih, w_hh = lp["w_ih"], lp["w_hh"]
        b = lp["b_ih"] + lp["b_hh"]
        H = w_hh.shape[1]

        def step(carry, x_t):
            h, c = carry
            gates = x_t @ w_ih.T + h @ w_hh.T + b
            i = jax.nn.sigmoid(gates[:, 0 * H:1 * H])
            f = jax.nn.sigmoid(gates[:, 1 * H:2 * H])
            g = jnp.tanh(gates[:, 2 * H:3 * H])
            o = jax.nn.sigmoid(gates[:, 3 * H:4 * H])
            c_new = f * c + i * g
            h_new = o * jnp.tanh(c_new)
            return (h_new, c_new), h_new

        init = (jnp.zeros((B, H), jnp.float32), jnp.zeros((B, H), jnp.float32))
        (_, _), act = lax.scan(step, init, act)
    y = act @ raw["linear_w"].T + raw["linear_b"]
    return jnp.transpose(y, (1, 0, 2))


if __name__ == "__main__":
    B, T = 2, 8
    INPUT_SIZE, HIDDEN_SIZE, NUM_LAYERS, OUT_FEATURES = 16, 32, 2, 4

    key = jax.random.PRNGKey(0)
    key, xk = jax.random.split(key)
    x = jax.random.normal(xk, (B, T, INPUT_SIZE), dtype=jnp.float32)

    raw = init_lstm_params_raw(key, INPUT_SIZE, HIDDEN_SIZE, NUM_LAYERS, OUT_FEATURES)
    params = pack_params(raw)

    y = jax.block_until_ready(lstm_forward(params, x))
    assert y.shape == (B, T, OUT_FEATURES), y.shape

    y_ref = jax.block_until_ready(lstm_forward_ref(raw, x))
    assert jnp.allclose(y, y_ref, atol=1e-4, rtol=1e-4), (
        "mismatch vs reference, max abs err = "
        + str(float(jnp.max(jnp.abs(y - y_ref)))))

    print("KERNEL_OK")
</pallas_src>

<mosaic_0001>
module attributes {stable_mosaic.version = 11 : i64} {
  func.func @_matmul_bias_kernel(%arg0: i32, %arg1: i32, %arg2: i32, %arg3: memref<16x128xf32, #tpu.memory_space<vmem>>, %arg4: memref<128x512xf32, #tpu.memory_space<vmem>>, %arg5: memref<1x512xf32, #tpu.memory_space<vmem>>, %arg6: memref<16x512xf32, #tpu.memory_space<vmem>>, %arg7: memref<16x512xf32, #tpu.memory_space<vmem>>) attributes {dimension_semantics = [#tpu.dimension_semantics<parallel>, #tpu.dimension_semantics<parallel>, #tpu.dimension_semantics<arbitrary>], iteration_bounds = array<i64: 1, 1, 1>, scalar_prefetch = 0 : i64, scratch_operands = 1 : i64, tpu.core_type = #tpu.core_type<tc>, window_params = [{transform_indices = @transform_0, window_bounds = array<i64: 16, 128>}, {transform_indices = @transform_1, window_bounds = array<i64: 128, 512>}, {transform_indices = @transform_2, window_bounds = array<i64: 1, 512>}, {transform_indices = @transform_3, window_bounds = array<i64: 16, 512>}]} {
    %c0_i32 = arith.constant 0 : i32
    %0 = arith.cmpi eq, %arg2, %c0_i32 : i32
    %1 = arith.extui %0 : i1 to i32
    %c0_i32_0 = arith.constant 0 : i32
    %2 = arith.cmpi ne, %1, %c0_i32_0 : i32
    scf.if %2 {
      %cst_10 = arith.constant 0.000000e+00 : f32
      %12 = vector.broadcast %cst_10 : f32 to vector<16x512xf32>
      %c0_11 = arith.constant 0 : index
      %c0_12 = arith.constant 0 : index
      %13 = vector.load %arg7[%c0_11, %c0_12] : memref<16x512xf32, #tpu.memory_space<vmem>>, vector<16x512xf32>
      tpu.vector_store %arg7[%c0_11, %c0_12], %12 {strides = array<i32>} : memref<16x512xf32, #tpu.memory_space<vmem>>, vector<16x512xf32>,
    } else {
    }
    %c0 = arith.constant 0 : index
    %c0_1 = arith.constant 0 : index
    %3 = vector.load %arg7[%c0, %c0_1] : memref<16x512xf32, #tpu.memory_space<vmem>>, vector<16x512xf32>
    %c0_2 = arith.constant 0 : index
    %c0_3 = arith.constant 0 : index
    %4 = vector.load %arg3[%c0_2, %c0_3] : memref<16x128xf32, #tpu.memory_space<vmem>>, vector<16x128xf32>
    %c0_4 = arith.constant 0 : index
    %c0_5 = arith.constant 0 : index
    %5 = vector.load %arg4[%c0_4, %c0_5] : memref<128x512xf32, #tpu.memory_space<vmem>>, vector<128x512xf32>
    %cst = arith.constant dense<0.000000e+00> : vector<16x512xf32>
    %6 = tpu.matmul %4, %5, %cst {dimension_numbers = #tpu.dot_dimension_numbers<[1], [0], [0], [1], [0, 0, 1, 1], [], []>} : vector<16x128xf32>, vector<128x512xf32>, vector<16x512xf32> -> vector<16x512xf32>
    %7 = arith.addf %3, %6 : vector<16x512xf32>
    %c0_6 = arith.constant 0 : index
    %c0_7 = arith.constant 0 : index
    %8 = vector.load %arg7[%c0_6, %c0_7] : memref<16x512xf32, #tpu.memory_space<vmem>>, vector<16x512xf32>
    tpu.vector_store %arg7[%c0_6, %c0_7], %7 {strides = array<i32>} : memref<16x512xf32, #tpu.memory_space<vmem>>, vector<16x512xf32>,
    %c0_i32_8 = arith.constant 0 : i32
    %9 = arith.cmpi eq, %arg2, %c0_i32_8 : i32
    %10 = arith.extui %9 : i1 to i32
    %c0_i32_9 = arith.constant 0 : i32
    %11 = arith.cmpi ne, %10, %c0_i32_9 : i32
    scf.if %11 {
      %c0_10 = arith.constant 0 : index
      %c0_11 = arith.constant 0 : index
      %12 = vector.load %arg7[%c0_10, %c0_11] : memref<16x512xf32, #tpu.memory_space<vmem>>, vector<16x512xf32>
      %c0_12 = arith.constant 0 : index
      %c0_13 = arith.constant 0 : index
      %13 = vector.load %arg5[%c0_12, %c0_13] : memref<1x512xf32, #tpu.memory_space<vmem>>, vector<1x512xf32>
      %14 = vector.broadcast %13 : vector<1x512xf32> to vector<16x512xf32>
      %15 = arith.addf %12, %14 : vector<16x512xf32>
      %c0_14 = arith.constant 0 : index
      %c0_15 = arith.constant 0 : index
      %16 = vector.load %arg6[%c0_14, %c0_15] : memref<16x512xf32, #tpu.memory_space<vmem>>, vector<16x512xf32>
      tpu.vector_store %arg6[%c0_14, %c0_15], %15 {strides = array<i32>} : memref<16x512xf32, #tpu.memory_space<vmem>>, vector<16x512xf32>,
    } else {
    }
    return
  }
  func.func @transform_0(%arg0: i32, %arg1: i32, %arg2: i32) -> (i32, i32) {
    %c0_i32 = arith.constant 0 : i32
    return %arg0, %arg2 : i32, i32
  }
  func.func @transform_1(%arg0: i32, %arg1: i32, %arg2: i32) -> (i32, i32) {
    %c0_i32 = arith.constant 0 : i32
    return %arg2, %arg1 : i32, i32
  }
  func.func @transform_2(%arg0: i32, %arg1: i32, %arg2: i32) -> (i32, i32) {
    %c0_i32 = arith.constant 0 : i32
    %c0_i32_0 = arith.constant 0 : i32
    return %c0_i32, %arg1 : i32, i32
  }
  func.func @transform_3(%arg0: i32, %arg1: i32, %arg2: i32) -> (i32, i32) {
    %c0_i32 = arith.constant 0 : i32
    return %arg0, %arg1 : i32, i32
  }
}

module attributes {stable_mosaic.version = 11 : i64} {
  func.func @_lstm_recurrence_kernel(%arg0: i32, %arg1: memref<8x2x512xf32, #tpu.memory_space<vmem>>, %arg2: memref<128x512xf32, #tpu.memory_space<any>>, %arg3: memref<8x2x128xf32, #tpu.memory_space<vmem>>, %arg4: memref<2x128xf32, #tpu.memory_space<vmem>>, %arg5: memref<2x128xf32, #tpu.memory_space<vmem>>, %arg6: memref<128x512xf32, #tpu.memory_space<vmem>>, %arg7: memref<!tpu.dma_semaphore, #tpu.memory_space<semaphore_mem>>) attributes {dimension_semantics = [#tpu.dimension_semantics<arbitrary>], iteration_bounds = array<i64: 1>, scalar_prefetch = 0 : i64, scratch_operands = 4 : i64, tpu.core_type = #tpu.core_type<tc>, window_params = [{transform_indices = @transform_0, window_bounds = array<i64: 8, 2, 512>}, {}, {transform_indices = @transform_2, window_bounds = array<i64: 8, 2, 128>}]} {
    %c0_i32 = arith.constant 0 : i32
    %0 = arith.cmpi eq, %arg0, %c0_i32 : i32
    %1 = arith.extui %0 : i1 to i32
    %c0_i32_0 = arith.constant 0 : i32
    %2 = arith.cmpi ne, %1, %c0_i32_0 : i32
    scf.if %2 {
      tpu.enqueue_dma source(%arg2 : memref<128x512xf32, #tpu.memory_space<any>>) target(%arg6 : memref<128x512xf32, #tpu.memory_space<vmem>>) target_semaphore(%arg7 : memref<!tpu.dma_semaphore, #tpu.memory_space<semaphore_mem>>)
      tpu.wait_dma2 semaphore(%arg7 : memref<!tpu.dma_semaphore, #tpu.memory_space<semaphore_mem>>) src(%arg2 : memref<128x512xf32, #tpu.memory_space<any>>) dst(%arg6 : memref<128x512xf32, #tpu.memory_space<vmem>>)
      %cst_88 = arith.constant 0.000000e+00 : f32
      %287 = vector.broadcast %cst_88 : f32 to vector<2x128xf32>
      %c0_89 = arith.constant 0 : index
      %c0_90 = arith.constant 0 : index
      %288 = vector.load %arg4[%c0_89, %c0_90] : memref<2x128xf32, #tpu.memory_space<vmem>>, vector<2x128xf32>
      tpu.vector_store %arg4[%c0_89, %c0_90], %287 {strides = array<i32>} : memref<2x128xf32, #tpu.memory_space<vmem>>, vector<2x128xf32>,
      %cst_91 = arith.constant 0.000000e+00 : f32
      %289 = vector.broadcast %cst_91 : f32 to vector<2x128xf32>
      %c0_92 = arith.constant 0 : index
      %c0_93 = arith.constant 0 : index
      %290 = vector.load %arg5[%c0_92, %c0_93] : memref<2x128xf32, #tpu.memory_space<vmem>>, vector<2x128xf32>
      tpu.vector_store %arg5[%c0_92, %c0_93], %289 {strides = array<i32>} : memref<2x128xf32, #tpu.memory_space<vmem>>, vector<2x128xf32>,
    } else {
    }
    %c0 = arith.constant 0 : index
    %c0_1 = arith.constant 0 : index
    %3 = vector.load %arg4[%c0, %c0_1] : memref<2x128xf32, #tpu.memory_space<vmem>>, vector<2x128xf32>
    %c0_2 = arith.constant 0 : index
    %c0_3 = arith.constant 0 : index
    %4 = vector.load %arg5[%c0_2, %c0_3] : memref<2x128xf32, #tpu.memory_space<vmem>>, vector<2x128xf32>
    %c0_i32_4 = arith.constant 0 : i32
    %5 = arith.index_cast %c0_i32_4 : i32 to index
    %c0_5 = arith.constant 0 : index
    %c0_6 = arith.constant 0 : index
    %6 = vector.load %arg1[%5, %c0_5, %c0_6] : memref<8x2x512xf32, #tpu.memory_space<vmem>>, vector<1x2x512xf32>
    %7 = vector.shape_cast %6 : vector<1x2x512xf32> to vector<2x512xf32>
    %c0_7 = arith.constant 0 : index
    %c0_8 = arith.constant 0 : index
    %8 = vector.load %arg6[%c0_7, %c0_8] : memref<128x512xf32, #tpu.memory_space<vmem>>, vector<128x512xf32>
    %cst = arith.constant dense<0.000000e+00> : vector<2x512xf32>
    %9 = tpu.matmul %3, %8, %cst {dimension_numbers = #tpu.dot_dimension_numbers<[1], [0], [0], [1], [0, 0, 1, 1], [], []>} : vector<2x128xf32>, vector<128x512xf32>, vector<2x512xf32> -> vector<2x512xf32>
    %10 = arith.addf %7, %9 : vector<2x512xf32>
    %11 = vector.extract_strided_slice %10 {offsets = [0, 0], sizes = [2, 128], strides = [1, 1]} : vector<2x512xf32> to vector<2x128xf32>
    %12 = arith.negf %11 : vector<2x128xf32>
    %13 = math.exp %12 : vector<2x128xf32>
    %cst_9 = arith.constant 1.000000e+00 : f32
    %14 = vector.broadcast %cst_9 : f32 to vector<2x128xf32>
    %15 = arith.addf %14, %13 : vector<2x128xf32>
    %16 = arith.divf %14, %15 : vector<2x128xf32>
    %17 = vector.extract_strided_slice %10 {offsets = [0, 128], sizes = [2, 128], strides = [1, 1]} : vector<2x512xf32> to vector<2x128xf32>
    %18 = arith.negf %17 : vector<2x128xf32>
    %19 = math.exp %18 : vector<2x128xf32>
    %cst_10 = arith.constant 1.000000e+00 : f32
    %20 = vector.broadcast %cst_10 : f32 to vector<2x128xf32>
    %21 = arith.addf %20, %19 : vector<2x128xf32>
    %22 = arith.divf %20, %21 : vector<2x128xf32>
    %23 = vector.extract_strided_slice %10 {offsets = [0, 256], sizes = [2, 128], strides = [1, 1]} : vector<2x512xf32> to vector<2x128xf32>
    %24 = math.tanh %23 : vector<2x128xf32>
    %25 = vector.extract_strided_slice %10 {offsets = [0, 384], sizes = [2, 128], strides = [1, 1]} : vector<2x512xf32> to vector<2x128xf32>
    %26 = arith.negf %25 : vector<2x128xf32>
    %27 = math.exp %26 : vector<2x128xf32>
    %cst_11 = arith.constant 1.000000e+00 : f32
    %28 = vector.broadcast %cst_11 : f32 to vector<2x128xf32>
    %29 = arith.addf %28, %27 : vector<2x128xf32>
    %30 = arith.divf %28, %29 : vector<2x128xf32>
    %31 = arith.mulf %22, %4 : vector<2x128xf32>
    %32 = arith.mulf %16, %24 : vector<2x128xf32>
    %33 = arith.addf %31, %32 : vector<2x128xf32>
    %34 = math.tanh %33 : vector<2x128xf32>
    %35 = arith.mulf %30, %34 : vector<2x128xf32>
    %36 = arith.index_cast %c0_i32_4 : i32 to index
    %c0_12 = arith.constant 0 : index
    %c0_13 = arith.constant 0 : index
    %37 = vector.load %arg3[%36, %c0_12, %c0_13] : memref<8x2x128xf32, #tpu.memory_space<vmem>>, vector<1x2x128xf32>
    %38 = vector.shape_cast %37 : vector<1x2x128xf32> to vector<2x128xf32>
    %39 = vector.shape_cast %35 : vector<2x128xf32> to vector<1x2x128xf32>
    tpu.vector_store %arg3[%36, %c0_12, %c0_13], %39 {strides = array<i32>} : memref<8x2x128xf32, #tpu.memory_space<vmem>>, vector<1x2x128xf32>,
    %c1_i32 = arith.constant 1 : i32
    %40 = arith.index_cast %c1_i32 : i32 to index
    %c0_14 = arith.constant 0 : index
    %c0_15 = arith.constant 0 : index
    %41 = vector.load %arg1[%40, %c0_14, %c0_15] : memref<8x2x512xf32, #tpu.memory_space<vmem>>, vector<1x2x512xf32>
    %42 = vector.shape_cast %41 : vector<1x2x512xf32> to vector<2x512xf32>
    %c0_16 = arith.constant 0 : index
    %c0_17 = arith.constant 0 : index
    %43 = vector.load %arg6[%c0_16, %c0_17] : memref<128x512xf32, #tpu.memory_space<vmem>>, vector<128x512xf32>
    %cst_18 = arith.constant dense<0.000000e+00> : vector<2x512xf32>
    %44 = tpu.matmul %35, %43, %cst_18 {dimension_numbers = #tpu.dot_dimension_numbers<[1], [0], [0], [1], [0, 0, 1, 1], [], []>} : vector<2x128xf32>, vector<128x512xf32>, vector<2x512xf32> -> vector<2x512xf32>
    %45 = arith.addf %42, %44 : vector<2x512xf32>
    %46 = vector.extract_strided_slice %45 {offsets = [0, 0], sizes = [2, 128], strides = [1, 1]} : vector<2x512xf32> to vector<2x128xf32>
    %47 = arith.negf %46 : vector<2x128xf32>
    %48 = math.exp %47 : vector<2x128xf32>
    %cst_19 = arith.constant 1.000000e+00 : f32
    %49 = vector.broadcast %cst_19 : f32 to vector<2x128xf32>
    %50 = arith.addf %49, %48 : vector<2x128xf32>
    %51 = arith.divf %49, %50 : vector<2x128xf32>
    %52 = vector.extract_strided_slice %45 {offsets = [0, 128], sizes = [2, 128], strides = [1, 1]} : vector<2x512xf32> to vector<2x128xf32>
    %53 = arith.negf %52 : vector<2x128xf32>
    %54 = math.exp %53 : vector<2x128xf32>
    %cst_20 = arith.constant 1.000000e+00 : f32
    %55 = vector.broadcast %cst_20 : f32 to vector<2x128xf32>
    %56 = arith.addf %55, %54 : vector<2x128xf32>
    %57 = arith.divf %55, %56 : vector<2x128xf32>
    %58 = vector.extract_strided_slice %45 {offsets = [0, 256], sizes = [2, 128], strides = [1, 1]} : vector<2x512xf32> to vector<2x128xf32>
    %59 = math.tanh %58 : vector<2x128xf32>
    %60 = vector.extract_strided_slice %45 {offsets = [0, 384], sizes = [2, 128], strides = [1, 1]} : vector<2x512xf32> to vector<2x128xf32>
    %61 = arith.negf %60 : vector<2x128xf32>
    %62 = math.exp %61 : vector<2x128xf32>
    %cst_21 = arith.constant 1.000000e+00 : f32
    %63 = vector.broadcast %cst_21 : f32 to vector<2x128xf32>
    %64 = arith.addf %63, %62 : vector<2x128xf32>
    %65 = arith.divf %63, %64 : vector<2x128xf32>
    %66 = arith.mulf %57, %33 : vector<2x128xf32>
    %67 = arith.mulf %51, %59 : vector<2x128xf32>
    %68 = arith.addf %66, %67 : vector<2x128xf32>
    %69 = math.tanh %68 : vector<2x128xf32>
    %70 = arith.mulf %65, %69 : vector<2x128xf32>
    %71 = arith.index_cast %c1_i32 : i32 to index
    %c0_22 = arith.constant 0 : index
    %c0_23 = arith.constant 0 : index
    %72 = vector.load %arg3[%71, %c0_22, %c0_23] : memref<8x2x128xf32, #tpu.memory_space<vmem>>, vector<1x2x128xf32>
    %73 = vector.shape_cast %72 : vector<1x2x128xf32> to vector<2x128xf32>
    %74 = vector.shape_cast %70 : vector<2x128xf32> to vector<1x2x128xf32>
    tpu.vector_store %arg3[%71, %c0_22, %c0_23], %74 {strides = array<i32>} : memref<8x2x128xf32, #tpu.memory_space<vmem>>, vector<1x2x128xf32>,
    %c2_i32 = arith.constant 2 : i32
    %75 = arith.index_cast %c2_i32 : i32 to index
    %c0_24 = arith.constant 0 : index
    %c0_25 = arith.constant 0 : index
    %76 = vector.load %arg1[%75, %c0_24, %c0_25] : memref<8x2x512xf32, #tpu.memory_space<vmem>>, vector<1x2x512xf32>
    %77 = vector.shape_cast %76 : vector<1x2x512xf32> to vector<2x512xf32>
    %c0_26 = arith.constant 0 : index
    %c0_27 = arith.constant 0 : index
    %78 = vector.load %arg6[%c0_26, %c0_27] : memref<128x512xf32, #tpu.memory_space<vmem>>, vector<128x512xf32>
    %cst_28 = arith.constant dense<0.000000e+00> : vector<2x512xf32>
    %79 = tpu.matmul %70, %78, %cst_28 {dimension_numbers = #tpu.dot_dimension_numbers<[1], [0], [0], [1], [0, 0, 1, 1], [], []>} : vector<2x128xf32>, vector<128x512xf32>, vector<2x512xf32> -> vector<2x512xf32>
    %80 = arith.addf %77, %79 : vector<2x512xf32>
    %81 = vector.extract_strided_slice %80 {offsets = [0, 0], sizes = [2, 128], strides = [1, 1]} : vector<2x512xf32> to vector<2x128xf32>
    %82 = arith.negf %81 : vector<2x128xf32>
    %83 = math.exp %82 : vector<2x128xf32>
    %cst_29 = arith.constant 1.000000e+00 : f32
    %84 = vector.broadcast %cst_29 : f32 to vector<2x128xf32>
    %85 = arith.addf %84, %83 : vector<2x128xf32>
    %86 = arith.divf %84, %85 : vector<2x128xf32>
    %87 = vector.extract_strided_slice %80 {offsets = [0, 128], sizes = [2, 128], strides = [1, 1]} : vector<2x512xf32> to vector<2x128xf32>
    %88 = arith.negf %87 : vector<2x128xf32>
    %89 = math.exp %88 : vector<2x128xf32>
    %cst_30 = arith.constant 1.000000e+00 : f32
    %90 = vector.broadcast %cst_30 : f32 to vector<2x128xf32>
    %91 = arith.addf %90, %89 : vector<2x128xf32>
    %92 = arith.divf %90, %91 : vector<2x128xf32>
    %93 = vector.extract_strided_slice %80 {offsets = [0, 256], sizes = [2, 128], strides = [1, 1]} : vector<2x512xf32> to vector<2x128xf32>
    %94 = math.tanh %93 : vector<2x128xf32>
    %95 = vector.extract_strided_slice %80 {offsets = [0, 384], sizes = [2, 128], strides = [1, 1]} : vector<2x512xf32> to vector<2x128xf32>
    %96 = arith.negf %95 : vector<2x128xf32>
    %97 = math.exp %96 : vector<2x128xf32>
    %cst_31 = arith.constant 1.000000e+00 : f32
    %98 = vector.broadcast %cst_31 : f32 to vector<2x128xf32>
    %99 = arith.addf %98, %97 : vector<2x128xf32>
    %100 = arith.divf %98, %99 : vector<2x128xf32>
    %101 = arith.mulf %92, %68 : vector<2x128xf32>
    %102 = arith.mulf %86, %94 : vector<2x128xf32>
    %103 = arith.addf %101, %102 : vector<2x128xf32>
    %104 = math.tanh %103 : vector<2x128xf32>
    %105 = arith.mulf %100, %104 : vector<2x128xf32>
    %106 = arith.index_cast %c2_i32 : i32 to index
    %c0_32 = arith.constant 0 : index
    %c0_33 = arith.constant 0 : index
    %107 = vector.load %arg3[%106, %c0_32, %c0_33] : memref<8x2x128xf32, #tpu.memory_space<vmem>>, vector<1x2x128xf32>
    %108 = vector.shape_cast %107 : vector<1x2x128xf32> to vector<2x128xf32>
    %109 = vector.shape_cast %105 : vector<2x128xf32> to vector<1x2x128xf32>
    tpu.vector_store %arg3[%106, %c0_32, %c0_33], %109 {strides = array<i32>} : memref<8x2x128xf32, #tpu.memory_space<vmem>>, vector<1x2x128xf32>,
    %c3_i32 = arith.constant 3 : i32
    %110 = arith.index_cast %c3_i32 : i32 to index
    %c0_34 = arith.constant 0 : index
    %c0_35 = arith.constant 0 : index
    %111 = vector.load %arg1[%110, %c0_34, %c0_35] : memref<8x2x512xf32, #tpu.memory_space<vmem>>, vector<1x2x512xf32>
    %112 = vector.shape_cast %111 : vector<1x2x512xf32> to vector<2x512xf32>
    %c0_36 = arith.constant 0 : index
    %c0_37 = arith.constant 0 : index
    %113 = vector.load %arg6[%c0_36, %c0_37] : memref<128x512xf32, #tpu.memory_space<vmem>>, vector<128x512xf32>
    %cst_38 = arith.constant dense<0.000000e+00> : vector<2x512xf32>
    %114 = tpu.matmul %105, %113, %cst_38 {dimension_numbers = #tpu.dot_dimension_numbers<[1], [0], [0], [1], [0, 0, 1, 1], [], []>} : vector<2x128xf32>, vector<128x512xf32>, vector<2x512xf32> -> vector<2x512xf32>
    %115 = arith.addf %112, %114 : vector<2x512xf32>
    %116 = vector.extract_strided_slice %115 {offsets = [0, 0], sizes = [2, 128], strides = [1, 1]} : vector<2x512xf32> to vector<2x128xf32>
    %117 = arith.negf %116 : vector<2x128xf32>
    %118 = math.exp %117 : vector<2x128xf32>
    %cst_39 = arith.constant 1.000000e+00 : f32
    %119 = vector.broadcast %cst_39 : f32 to vector<2x128xf32>
    %120 = arith.addf %119, %118 : vector<2x128xf32>
    %121 = arith.divf %119, %120 : vector<2x128xf32>
    %122 = vector.extract_strided_slice %115 {offsets = [0, 128], sizes = [2, 128], strides = [1, 1]} : vector<2x512xf32> to vector<2x128xf32>
    %123 = arith.negf %122 : vector<2x128xf32>
    %124 = math.exp %123 : vector<2x128xf32>
    %cst_40 = arith.constant 1.000000e+00 : f32
    %125 = vector.broadcast %cst_40 : f32 to vector<2x128xf32>
    %126 = arith.addf %125, %124 : vector<2x128xf32>
    %127 = arith.divf %125, %126 : vector<2x128xf32>
    %128 = vector.extract_strided_slice %115 {offsets = [0, 256], sizes = [2, 128], strides = [1, 1]} : vector<2x512xf32> to vector<2x128xf32>
    %129 = math.tanh %128 : vector<2x128xf32>
    %130 = vector.extract_strided_slice %115 {offsets = [0, 384], sizes = [2, 128], strides = [1, 1]} : vector<2x512xf32> to vector<2x128xf32>
    %131 = arith.negf %130 : vector<2x128xf32>
    %132 = math.exp %131 : vector<2x128xf32>
    %cst_41 = arith.constant 1.000000e+00 : f32
    %133 = vector.broadcast %cst_41 : f32 to vector<2x128xf32>
    %134 = arith.addf %133, %132 : vector<2x128xf32>
    %135 = arith.divf %133, %134 : vector<2x128xf32>
    %136 = arith.mulf %127, %103 : vector<2x128xf32>
    %137 = arith.mulf %121, %129 : vector<2x128xf32>
    %138 = arith.addf %136, %137 : vector<2x128xf32>
    %139 = math.tanh %138 : vector<2x128xf32>
    %140 = arith.mulf %135, %139 : vector<2x128xf32>
    %141 = arith.index_cast %c3_i32 : i32 to index
    %c0_42 = arith.constant 0 : index
    %c0_43 = arith.constant 0 : index
    %142 = vector.load %arg3[%141, %c0_42, %c0_43] : memref<8x2x128xf32, #tpu.memory_space<vmem>>, vector<1x2x128xf32>
    %143 = vector.shape_cast %142 : vector<1x2x128xf32> to vector<2x128xf32>
    %144 = vector.shape_cast %140 : vector<2x128xf32> to vector<1x2x128xf32>
    tpu.vector_store %arg3[%141, %c0_42, %c0_43], %144 {strides = array<i32>} : memref<8x2x128xf32, #tpu.memory_space<vmem>>, vector<1x2x128xf32>,
    %c4_i32 = arith.constant 4 : i32
    %145 = arith.index_cast %c4_i32 : i32 to index
    %c0_44 = arith.constant 0 : index
    %c0_45 = arith.constant 0 : index
    %146 = vector.load %arg1[%145, %c0_44, %c0_45] : memref<8x2x512xf32, #tpu.memory_space<vmem>>, vector<1x2x512xf32>
    %147 = vector.shape_cast %146 : vector<1x2x512xf32> to vector<2x512xf32>
    %c0_46 = arith.constant 0 : index
    %c0_47 = arith.constant 0 : index
    %148 = vector.load %arg6[%c0_46, %c0_47] : memref<128x512xf32, #tpu.memory_space<vmem>>, vector<128x512xf32>
    %cst_48 = arith.constant dense<0.000000e+00> : vector<2x512xf32>
    %149 = tpu.matmul %140, %148, %cst_48 {dimension_numbers = #tpu.dot_dimension_numbers<[1], [0], [0], [1], [0, 0, 1, 1], [], []>} : vector<2x128xf32>, vector<128x512xf32>, vector<2x512xf32> -> vector<2x512xf32>
    %150 = arith.addf %147, %149 : vector<2x512xf32>
    %151 = vector.extract_strided_slice %150 {offsets = [0, 0], sizes = [2, 128], strides = [1, 1]} : vector<2x512xf32> to vector<2x128xf32>
    %152 = arith.negf %151 : vector<2x128xf32>
    %153 = math.exp %152 : vector<2x128xf32>
    %cst_49 = arith.constant 1.000000e+00 : f32
    %154 = vector.broadcast %cst_49 : f32 to vector<2x128xf32>
    %155 = arith.addf %154, %153 : vector<2x128xf32>
    %156 = arith.divf %154, %155 : vector<2x128xf32>
    %157 = vector.extract_strided_slice %150 {offsets = [0, 128], sizes = [2, 128], strides = [1, 1]} : vector<2x512xf32> to vector<2x128xf32>
    %158 = arith.negf %157 : vector<2x128xf32>
    %159 = math.exp %158 : vector<2x128xf32>
    %cst_50 = arith.constant 1.000000e+00 : f32
    %160 = vector.broadcast %cst_50 : f32 to vector<2x128xf32>
    %161 = arith.addf %160, %159 : vector<2x128xf32>
    %162 = arith.divf %160, %161 : vector<2x128xf32>
    %163 = vector.extract_strided_slice %150 {offsets = [0, 256], sizes = [2, 128], strides = [1, 1]} : vector<2x512xf32> to vector<2x128xf32>
    %164 = math.tanh %163 : vector<2x128xf32>
    %165 = vector.extract_strided_slice %150 {offsets = [0, 384], sizes = [2, 128], strides = [1, 1]} : vector<2x512xf32> to vector<2x128xf32>
    %166 = arith.negf %165 : vector<2x128xf32>
    %167 = math.exp %166 : vector<2x128xf32>
    %cst_51 = arith.constant 1.000000e+00 : f32
    %168 = vector.broadcast %cst_51 : f32 to vector<2x128xf32>
    %169 = arith.addf %168, %167 : vector<2x128xf32>
    %170 = arith.divf %168, %169 : vector<2x128xf32>
    %171 = arith.mulf %162, %138 : vector<2x128xf32>
    %172 = arith.mulf %156, %164 : vector<2x128xf32>
    %173 = arith.addf %171, %172 : vector<2x128xf32>
    %174 = math.tanh %173 : vector<2x128xf32>
    %175 = arith.mulf %170, %174 : vector<2x128xf32>
    %176 = arith.index_cast %c4_i32 : i32 to index
    %c0_52 = arith.constant 0 : index
    %c0_53 = arith.constant 0 : index
    %177 = vector.load %arg3[%176, %c0_52, %c0_53] : memref<8x2x128xf32, #tpu.memory_space<vmem>>, vector<1x2x128xf32>
    %178 = vector.shape_cast %177 : vector<1x2x128xf32> to vector<2x128xf32>
    %179 = vector.shape_cast %175 : vector<2x128xf32> to vector<1x2x128xf32>
    tpu.vector_store %arg3[%176, %c0_52, %c0_53], %179 {strides = array<i32>} : memref<8x2x128xf32, #tpu.memory_space<vmem>>, vector<1x2x128xf32>,
    %c5_i32 = arith.constant 5 : i32
    %180 = arith.index_cast %c5_i32 : i32 to index
    %c0_54 = arith.constant 0 : index
    %c0_55 = arith.constant 0 : index
    %181 = vector.load %arg1[%180, %c0_54, %c0_55] : memref<8x2x512xf32, #tpu.memory_space<vmem>>, vector<1x2x512xf32>
    %182 = vector.shape_cast %181 : vector<1x2x512xf32> to vector<2x512xf32>
    %c0_56 = arith.constant 0 : index
    %c0_57 = arith.constant 0 : index
    %183 = vector.load %arg6[%c0_56, %c0_57] : memref<128x512xf32, #tpu.memory_space<vmem>>, vector<128x512xf32>
    %cst_58 = arith.constant dense<0.000000e+00> : vector<2x512xf32>
    %184 = tpu.matmul %175, %183, %cst_58 {dimension_numbers = #tpu.dot_dimension_numbers<[1], [0], [0], [1], [0, 0, 1, 1], [], []>} : vector<2x128xf32>, vector<128x512xf32>, vector<2x512xf32> -> vector<2x512xf32>
    %185 = arith.addf %182, %184 : vector<2x512xf32>
    %186 = vector.extract_strided_slice %185 {offsets = [0, 0], sizes = [2, 128], strides = [1, 1]} : vector<2x512xf32> to vector<2x128xf32>
    %187 = arith.negf %186 : vector<2x128xf32>
    %188 = math.exp %187 : vector<2x128xf32>
    %cst_59 = arith.constant 1.000000e+00 : f32
    %189 = vector.broadcast %cst_59 : f32 to vector<2x128xf32>
    %190 = arith.addf %189, %188 : vector<2x128xf32>
    %191 = arith.divf %189, %190 : vector<2x128xf32>
    %192 = vector.extract_strided_slice %185 {offsets = [0, 128], sizes = [2, 128], strides = [1, 1]} : vector<2x512xf32> to vector<2x128xf32>
    %193 = arith.negf %192 : vector<2x128xf32>
    %194 = math.exp %193 : vector<2x128xf32>
    %cst_60 = arith.constant 1.000000e+00 : f32
    %195 = vector.broadcast %cst_60 : f32 to vector<2x128xf32>
    %196 = arith.addf %195, %194 : vector<2x128xf32>
    %197 = arith.divf %195, %196 : vector<2x128xf32>
    %198 = vector.extract_strided_slice %185 {offsets = [0, 256], sizes = [2, 128], strides = [1, 1]} : vector<2x512xf32> to vector<2x128xf32>
    %199 = math.tanh %198 : vector<2x128xf32>
    %200 = vector.extract_strided_slice %185 {offsets = [0, 384], sizes = [2, 128], strides = [1, 1]} : vector<2x512xf32> to vector<2x128xf32>
    %201 = arith.negf %200 : vector<2x128xf32>
    %202 = math.exp %201 : vector<2x128xf32>
    %cst_61 = arith.constant 1.000000e+00 : f32
    %203 = vector.broadcast %cst_61 : f32 to vector<2x128xf32>
    %204 = arith.addf %203, %202 : vector<2x128xf32>
    %205 = arith.divf %203, %204 : vector<2x128xf32>
    %206 = arith.mulf %197, %173 : vector<2x128xf32>
    %207 = arith.mulf %191, %199 : vector<2x128xf32>
    %208 = arith.addf %206, %207 : vector<2x128xf32>
    %209 = math.tanh %208 : vector<2x128xf32>
    %210 = arith.mulf %205, %209 : vector<2x128xf32>
    %211 = arith.index_cast %c5_i32 : i32 to index
    %c0_62 = arith.constant 0 : index
    %c0_63 = arith.constant 0 : index
    %212 = vector.load %arg3[%211, %c0_62, %c0_63] : memref<8x2x128xf32, #tpu.memory_space<vmem>>, vector<1x2x128xf32>
    %213 = vector.shape_cast %212 : vector<1x2x128xf32> to vector<2x128xf32>
    %214 = vector.shape_cast %210 : vector<2x128xf32> to vector<1x2x128xf32>
    tpu.vector_store %arg3[%211, %c0_62, %c0_63], %214 {strides = array<i32>} : memref<8x2x128xf32, #tpu.memory_space<vmem>>, vector<1x2x128xf32>,
    %c6_i32 = arith.constant 6 : i32
    %215 = arith.index_cast %c6_i32 : i32 to index
    %c0_64 = arith.constant 0 : index
    %c0_65 = arith.constant 0 : index
    %216 = vector.load %arg1[%215, %c0_64, %c0_65] : memref<8x2x512xf32, #tpu.memory_space<vmem>>, vector<1x2x512xf32>
    %217 = vector.shape_cast %216 : vector<1x2x512xf32> to vector<2x512xf32>
    %c0_66 = arith.constant 0 : index
    %c0_67 = arith.constant 0 : index
    %218 = vector.load %arg6[%c0_66, %c0_67] : memref<128x512xf32, #tpu.memory_space<vmem>>, vector<128x512xf32>
    %cst_68 = arith.constant dense<0.000000e+00> : vector<2x512xf32>
    %219 = tpu.matmul %210, %218, %cst_68 {dimension_numbers = #tpu.dot_dimension_numbers<[1], [0], [0], [1], [0, 0, 1, 1], [], []>} : vector<2x128xf32>, vector<128x512xf32>, vector<2x512xf32> -> vector<2x512xf32>
    %220 = arith.addf %217, %219 : vector<2x512xf32>
    %221 = vector.extract_strided_slice %220 {offsets = [0, 0], sizes = [2, 128], strides = [1, 1]} : vector<2x512xf32> to vector<2x128xf32>
    %222 = arith.negf %221 : vector<2x128xf32>
    %223 = math.exp %222 : vector<2x128xf32>
    %cst_69 = arith.constant 1.000000e+00 : f32
    %224 = vector.broadcast %cst_69 : f32 to vector<2x128xf32>
    %225 = arith.addf %224, %223 : vector<2x128xf32>
    %226 = arith.divf %224, %225 : vector<2x128xf32>
    %227 = vector.extract_strided_slice %220 {offsets = [0, 128], sizes = [2, 128], strides = [1, 1]} : vector<2x512xf32> to vector<2x128xf32>
    %228 = arith.negf %227 : vector<2x128xf32>
    %229 = math.exp %228 : vector<2x128xf32>
    %cst_70 = arith.constant 1.000000e+00 : f32
    %230 = vector.broadcast %cst_70 : f32 to vector<2x128xf32>
    %231 = arith.addf %230, %229 : vector<2x128xf32>
    %232 = arith.divf %230, %231 : vector<2x128xf32>
    %233 = vector.extract_strided_slice %220 {offsets = [0, 256], sizes = [2, 128], strides = [1, 1]} : vector<2x512xf32> to vector<2x128xf32>
    %234 = math.tanh %233 : vector<2x128xf32>
    %235 = vector.extract_strided_slice %220 {offsets = [0, 384], sizes = [2, 128], strides = [1, 1]} : vector<2x512xf32> to vector<2x128xf32>
    %236 = arith.negf %235 : vector<2x128xf32>
    %237 = math.exp %236 : vector<2x128xf32>
    %cst_71 = arith.constant 1.000000e+00 : f32
    %238 = vector.broadcast %cst_71 : f32 to vector<2x128xf32>
    %239 = arith.addf %238, %237 : vector<2x128xf32>
    %240 = arith.divf %238, %239 : vector<2x128xf32>
    %241 = arith.mulf %232, %208 : vector<2x128xf32>
    %242 = arith.mulf %226, %234 : vector<2x128xf32>
    %243 = arith.addf %241, %242 : vector<2x128xf32>
    %244 = math.tanh %243 : vector<2x128xf32>
    %245 = arith.mulf %240, %244 : vector<2x128xf32>
    %246 = arith.index_cast %c6_i32 : i32 to index
    %c0_72 = arith.constant 0 : index
    %c0_73 = arith.constant 0 : index
    %247 = vector.load %arg3[%246, %c0_72, %c0_73] : memref<8x2x128xf32, #tpu.memory_space<vmem>>, vector<1x2x128xf32>
    %248 = vector.shape_cast %247 : vector<1x2x128xf32> to vector<2x128xf32>
    %249 = vector.shape_cast %245 : vector<2x128xf32> to vector<1x2x128xf32>
    tpu.vector_store %arg3[%246, %c0_72, %c0_73], %249 {strides = array<i32>} : memref<8x2x128xf32, #tpu.memory_space<vmem>>, vector<1x2x128xf32>,
    %c7_i32 = arith.constant 7 : i32
    %250 = arith.index_cast %c7_i32 : i32 to index
    %c0_74 = arith.constant 0 : index
    %c0_75 = arith.constant 0 : index
    %251 = vector.load %arg1[%250, %c0_74, %c0_75] : memref<8x2x512xf32, #tpu.memory_space<vmem>>, vector<1x2x512xf32>
    %252 = vector.shape_cast %251 : vector<1x2x512xf32> to vector<2x512xf32>
    %c0_76 = arith.constant 0 : index
    %c0_77 = arith.constant 0 : index
    %253 = vector.load %arg6[%c0_76, %c0_77] : memref<128x512xf32, #tpu.memory_space<vmem>>, vector<128x512xf32>
    %cst_78 = arith.constant dense<0.000000e+00> : vector<2x512xf32>
    %254 = tpu.matmul %245, %253, %cst_78 {dimension_numbers = #tpu.dot_dimension_numbers<[1], [0], [0], [1], [0, 0, 1, 1], [], []>} : vector<2x128xf32>, vector<128x512xf32>, vector<2x512xf32> -> vector<2x512xf32>
    %255 = arith.addf %252, %254 : vector<2x512xf32>
    %256 = vector.extract_strided_slice %255 {offsets = [0, 0], sizes = [2, 128], strides = [1, 1]} : vector<2x512xf32> to vector<2x128xf32>
    %257 = arith.negf %256 : vector<2x128xf32>
    %258 = math.exp %257 : vector<2x128xf32>
    %cst_79 = arith.constant 1.000000e+00 : f32
    %259 = vector.broadcast %cst_79 : f32 to vector<2x128xf32>
    %260 = arith.addf %259, %258 : vector<2x128xf32>
    %261 = arith.divf %259, %260 : vector<2x128xf32>
    %262 = vector.extract_strided_slice %255 {offsets = [0, 128], sizes = [2, 128], strides = [1, 1]} : vector<2x512xf32> to vector<2x128xf32>
    %263 = arith.negf %262 : vector<2x128xf32>
    %264 = math.exp %263 : vector<2x128xf32>
    %cst_80 = arith.constant 1.000000e+00 : f32
    %265 = vector.broadcast %cst_80 : f32 to vector<2x128xf32>
    %266 = arith.addf %265, %264 : vector<2x128xf32>
    %267 = arith.divf %265, %266 : vector<2x128xf32>
    %268 = vector.extract_strided_slice %255 {offsets = [0, 256], sizes = [2, 128], strides = [1, 1]} : vector<2x512xf32> to vector<2x128xf32>
    %269 = math.tanh %268 : vector<2x128xf32>
    %270 = vector.extract_strided_slice %255 {offsets = [0, 384], sizes = [2, 128], strides = [1, 1]} : vector<2x512xf32> to vector<2x128xf32>
    %271 = arith.negf %270 : vector<2x128xf32>
    %272 = math.exp %271 : vector<2x128xf32>
    %cst_81 = arith.constant 1.000000e+00 : f32
    %273 = vector.broadcast %cst_81 : f32 to vector<2x128xf32>
    %274 = arith.addf %273, %272 : vector<2x128xf32>
    %275 = arith.divf %273, %274 : vector<2x128xf32>
    %276 = arith.mulf %267, %243 : vector<2x128xf32>
    %277 = arith.mulf %261, %269 : vector<2x128xf32>
    %278 = arith.addf %276, %277 : vector<2x128xf32>
    %279 = math.tanh %278 : vector<2x128xf32>
    %280 = arith.mulf %275, %279 : vector<2x128xf32>
    %281 = arith.index_cast %c7_i32 : i32 to index
    %c0_82 = arith.constant 0 : index
    %c0_83 = arith.constant 0 : index
    %282 = vector.load %arg3[%281, %c0_82, %c0_83] : memref<8x2x128xf32, #tpu.memory_space<vmem>>, vector<1x2x128xf32>
    %283 = vector.shape_cast %282 : vector<1x2x128xf32> to vector<2x128xf32>
    %284 = vector.shape_cast %280 : vector<2x128xf32> to vector<1x2x128xf32>
    tpu.vector_store %arg3[%281, %c0_82, %c0_83], %284 {strides = array<i32>} : memref<8x2x128xf32, #tpu.memory_space<vmem>>, vector<1x2x128xf32>,
    %c8_i32 = arith.constant 8 : i32
    %c0_84 = arith.constant 0 : index
    %c0_85 = arith.constant 0 : index
    %285 = vector.load %arg4[%c0_84, %c0_85] : memref<2x128xf32, #tpu.memory_space<vmem>>, vector<2x128xf32>
    tpu.vector_store %arg4[%c0_84, %c0_85], %280 {strides = array<i32>} : memref<2x128xf32, #tpu.memory_space<vmem>>, vector<2x128xf32>,
    %c0_86 = arith.constant 0 : index
    %c0_87 = arith.constant 0 : index
    %286 = vector.load %arg5[%c0_86, %c0_87] : memref<2x128xf32, #tpu.memory_space<vmem>>, vector<2x128xf32>
    tpu.vector_store %arg5[%c0_86, %c0_87], %278 {strides = array<i32>} : memref<2x128xf32, #tpu.memory_space<vmem>>, vector<2x128xf32>,
    return
  }
  func.func @transform_0(%arg0: i32) -> (i32, i32, i32) {
    %c0_i32 = arith.constant 0 : i32
    %c0_i32_0 = arith.constant 0 : i32
    %c0_i32_1 = arith.constant 0 : i32
    return %arg0, %c0_i32, %c0_i32_0 : i32, i32, i32
  }
  func.func @transform_2(%arg0: i32) -> (i32, i32, i32) {
    %c0_i32 = arith.constant 0 : i32
    %c0_i32_0 = arith.constant 0 : i32
    %c0_i32_1 = arith.constant 0 : i32
    return %arg0, %c0_i32, %c0_i32_0 : i32, i32, i32
  }
}

module attributes {stable_mosaic.version = 11 : i64} {
  func.func @_matmul_bias_kernel(%arg0: i32, %arg1: i32, %arg2: i32, %arg3: memref<16x128xf32, #tpu.memory_space<vmem>>, %arg4: memref<128x128xf32, #tpu.memory_space<vmem>>, %arg5: memref<1x128xf32, #tpu.memory_space<vmem>>, %arg6: memref<16x128xf32, #tpu.memory_space<vmem>>, %arg7: memref<16x128xf32, #tpu.memory_space<vmem>>) attributes {dimension_semantics = [#tpu.dimension_semantics<parallel>, #tpu.dimension_semantics<parallel>, #tpu.dimension_semantics<arbitrary>], iteration_bounds = array<i64: 1, 1, 1>, scalar_prefetch = 0 : i64, scratch_operands = 1 : i64, tpu.core_type = #tpu.core_type<tc>, window_params = [{transform_indices = @transform_0, window_bounds = array<i64: 16, 128>}, {transform_indices = @transform_1, window_bounds = array<i64: 128, 128>}, {transform_indices = @transform_2, window_bounds = array<i64: 1, 128>}, {transform_indices = @transform_3, window_bounds = array<i64: 16, 128>}]} {
    %c0_i32 = arith.constant 0 : i32
    %0 = arith.cmpi eq, %arg2, %c0_i32 : i32
    %1 = arith.extui %0 : i1 to i32
    %c0_i32_0 = arith.constant 0 : i32
    %2 = arith.cmpi ne, %1, %c0_i32_0 : i32
    scf.if %2 {
      %cst_10 = arith.constant 0.000000e+00 : f32
      %12 = vector.broadcast %cst_10 : f32 to vector<16x128xf32>
      %c0_11 = arith.constant 0 : index
      %c0_12 = arith.constant 0 : index
      %13 = vector.load %arg7[%c0_11, %c0_12] : memref<16x128xf32, #tpu.memory_space<vmem>>, vector<16x128xf32>
      tpu.vector_store %arg7[%c0_11, %c0_12], %12 {strides = array<i32>} : memref<16x128xf32, #tpu.memory_space<vmem>>, vector<16x128xf32>,
    } else {
    }
    %c0 = arith.constant 0 : index
    %c0_1 = arith.constant 0 : index
    %3 = vector.load %arg7[%c0, %c0_1] : memref<16x128xf32, #tpu.memory_space<vmem>>, vector<16x128xf32>
    %c0_2 = arith.constant 0 : index
    %c0_3 = arith.constant 0 : index
    %4 = vector.load %arg3[%c0_2, %c0_3] : memref<16x128xf32, #tpu.memory_space<vmem>>, vector<16x128xf32>
    %c0_4 = arith.constant 0 : index
    %c0_5 = arith.constant 0 : index
    %5 = vector.load %arg4[%c0_4, %c0_5] : memref<128x128xf32, #tpu.memory_space<vmem>>, vector<128x128xf32>
    %cst = arith.constant dense<0.000000e+00> : vector<16x128xf32>
    %6 = tpu.matmul %4, %5, %cst {dimension_numbers = #tpu.dot_dimension_numbers<[1], [0], [0], [1], [0, 0, 1, 1], [], []>} : vector<16x128xf32>, vector<128x128xf32>, vector<16x128xf32> -> vector<16x128xf32>
    %7 = arith.addf %3, %6 : vector<16x128xf32>
    %c0_6 = arith.constant 0 : index
    %c0_7 = arith.constant 0 : index
    %8 = vector.load %arg7[%c0_6, %c0_7] : memref<16x128xf32, #tpu.memory_space<vmem>>, vector<16x128xf32>
    tpu.vector_store %arg7[%c0_6, %c0_7], %7 {strides = array<i32>} : memref<16x128xf32, #tpu.memory_space<vmem>>, vector<16x128xf32>,
    %c0_i32_8 = arith.constant 0 : i32
    %9 = arith.cmpi eq, %arg2, %c0_i32_8 : i32
    %10 = arith.extui %9 : i1 to i32
    %c0_i32_9 = arith.constant 0 : i32
    %11 = arith.cmpi ne, %10, %c0_i32_9 : i32
    scf.if %11 {
      %c0_10 = arith.constant 0 : index
      %c0_11 = arith.constant 0 : index
      %12 = vector.load %arg7[%c0_10, %c0_11] : memref<16x128xf32, #tpu.memory_space<vmem>>, vector<16x128xf32>
      %c0_12 = arith.constant 0 : index
      %c0_13 = arith.constant 0 : index
      %13 = vector.load %arg5[%c0_12, %c0_13] : memref<1x128xf32, #tpu.memory_space<vmem>>, vector<1x128xf32>
      %14 = vector.broadcast %13 : vector<1x128xf32> to vector<16x128xf32>
      %15 = arith.addf %12, %14 : vector<16x128xf32>
      %c0_14 = arith.constant 0 : index
      %c0_15 = arith.constant 0 : index
      %16 = vector.load %arg6[%c0_14, %c0_15] : memref<16x128xf32, #tpu.memory_space<vmem>>, vector<16x128xf32>
      tpu.vector_store %arg6[%c0_14, %c0_15], %15 {strides = array<i32>} : memref<16x128xf32, #tpu.memory_space<vmem>>, vector<16x128xf32>,
    } else {
    }
    return
  }
  func.func @transform_0(%arg0: i32, %arg1: i32, %arg2: i32) -> (i32, i32) {
    %c0_i32 = arith.constant 0 : i32
    return %arg0, %arg2 : i32, i32
  }
  func.func @transform_1(%arg0: i32, %arg1: i32, %arg2: i32) -> (i32, i32) {
    %c0_i32 = arith.constant 0 : i32
    return %arg2, %arg1 : i32, i32
  }
  func.func @transform_2(%arg0: i32, %arg1: i32, %arg2: i32) -> (i32, i32) {
    %c0_i32 = arith.constant 0 : i32
    %c0_i32_0 = arith.constant 0 : i32
    return %c0_i32, %arg1 : i32, i32
  }
  func.func @transform_3(%arg0: i32, %arg1: i32, %arg2: i32) -> (i32, i32) {
    %c0_i32 = arith.constant 0 : i32
    return %arg0, %arg1 : i32, i32
  }
}

</mosaic_0001>

<bundles_post_ra>
// kernel: lstm_forward.5
= control target key start
LH: loop header
LB: loop body
LE: loop exit
PB: predicated region body
PF: predicated region fallthrough
CT: control target
= control target key end

     0   :  { %v388_v3 = vmov 0.0   ;;  %s638_s1 = inlined_call_operand.vmem [shape: f32[128,512], index: 1, kind: input, shape index: {}]   ;;  %s639_s0 = inlined_call_operand.vmem [shape: f32[16,128], index: 0, kind: input, shape index: {}]   ;;  %s640_s2 = inlined_call_operand.vmem [shape: f32[1,512], index: 2, kind: input, shape index: {}]   ;;  %s641_s3 = inlined_call_operand.vmem [shape: f32[16,512], index: 3, kind: output, shape index: {}]  }
   0x1   :  { %v37_v0 = vld [vmem:[%s638_s1 + $0x8] sm:$0xff]  ;;  %v39_v2 = vld [vmem:[%s638_s1 + $0x18] sm:$0xff]  ;;  %164 = vmatprep.mubr.f32.mxu0 %v388_v3  ;;  %241 = vmatprep.mubr.f32.mxu1 %v388_v3  ;;  %v36_v6 = vld [vmem:[%s638_s1] sm:$0xff] }
   0x2   :  { %v41_v1 = vld [vmem:[%s638_s1 + $0x28] sm:$0xff]  ;;  %v43_v5 = vld [vmem:[%s638_s1 + $0x38] sm:$0xff]  ;;  %v40_v7 = vld [vmem:[%s638_s1 + $0x20] sm:$0xff] }
   0x3   :  { %v323_v4 = vpack.c.bf16 %v41_v1, %v37_v0  ;;  %v355_v8 = vpack.c.bf16 %v43_v5, %v39_v2  ;;  %v325_v9 = vpack.c.bf16 %v40_v7, %v36_v6  ;;  %v38_v10 = vld [vmem:[%s638_s1 + $0x10] sm:$0xff]  ;;  %v45_v12 = vld [vmem:[%s638_s1 + $0x48] sm:$0xff]  ;;  %v47_v15 = vld [vmem:[%s638_s1 + $0x58] sm:$0xff] }
   0x4   :  { %v42_v11 = vld [vmem:[%s638_s1 + $0x30] sm:$0xff]  ;;  %v49_v14 = vld [vmem:[%s638_s1 + $0x68] sm:$0xff]  ;;  %v51_v16 = vld [vmem:[%s638_s1 + $0x78] sm:$0xff] }
   0x5   :  { %324 = vmatprep.subr.bf16.mxu0 %v323_v4  ;;  %v357_v13 = vpack.c.bf16 %v42_v11, %v38_v10  ;;  %356 = vmatprep.subr.bf16.mxu1 %v355_v8  ;;  %v327_v17 = vpack.c.bf16 %v49_v14, %v45_v12  ;;  %v359_v18 = vpack.c.bf16 %v51_v16, %v47_v15  ;;  %v44_v19 = vld [vmem:[%s638_s1 + $0x40] sm:$0xff]  ;;  %v46_v21 = vld [vmem:[%s638_s1 + $0x50] sm:$0xff]  ;;  %v53_v24 = vld [vmem:[%s638_s1 + $0x88] sm:$0xff] }
   0x6   :  { %326 = vmatpush1.bf16.msra.mxu0 %v325_v9  ;;  %v48_v20 = vld [vmem:[%s638_s1 + $0x60] sm:$0xff]  ;;  %v50_v23 = vld [vmem:[%s638_s1 + $0x70] sm:$0xff]  ;;  %v57_v25 = vld [vmem:[%s638_s1 + $0xa8] sm:$0xff] }
   0x7   :  { %358 = vmatpush1.bf16.msra.mxu1 %v357_v13  ;;  %v329_v22 = vpack.c.bf16 %v48_v20, %v44_v19  ;;  %328 = vmatprep.subr.bf16.mxu0 %v327_v17  ;;  %v361_v26 = vpack.c.bf16 %v50_v23, %v46_v21  ;;  %v331_v27 = vpack.c.bf16 %v57_v25, %v53_v24  ;;  %v55_v28 = vld [vmem:[%s638_s1 + $0x98] sm:$0xff]  ;;  %v52_v30 = vld [vmem:[%s638_s1 + $0x80] sm:$0xff]  ;;  %v54_v33 = vld [vmem:[%s638_s1 + $0x90] sm:$0xff] }
   0x8   :  { %360 = vmatprep.subr.bf16.mxu1 %v359_v18  ;;  %v59_v29 = vld [vmem:[%s638_s1 + $0xb8] sm:$0xff]  ;;  %v56_v32 = vld [vmem:[%s638_s1 + $0xa0] sm:$0xff]  ;;  %v58_v34 = vld [vmem:[%s638_s1 + $0xb0] sm:$0xff] }
   0x9   :  { %v363_v31 = vpack.c.bf16 %v59_v29, %v55_v28  ;;  %v333_v35 = vpack.c.bf16 %v56_v32, %v52_v30  ;;  %v61_v36 = vld [vmem:[%s638_s1 + $0xc8] sm:$0xff]  ;;  %v63_v38 = vld [vmem:[%s638_s1 + $0xd8] sm:$0xff]  ;;  %v365_v39 = vpack.c.bf16 %v58_v34, %v54_v33  ;;  %v60_v42 = vld [vmem:[%s638_s1 + $0xc0] sm:$0xff] }
   0xa   :  { %330 = vmatpush1.bf16.msra.mxu0 %v329_v22  ;;  %v65_v37 = vld [vmem:[%s638_s1 + $0xe8] sm:$0xff]  ;;  %v67_v41 = vld [vmem:[%s638_s1 + $0xf8] sm:$0xff]  ;;  %v64_v43 = vld [vmem:[%s638_s1 + $0xe0] sm:$0xff] }
   0xb   :  { %362 = vmatpush1.bf16.msra.mxu1 %v361_v26  ;;  %332 = vmatprep.subr.bf16.mxu0 %v331_v27  ;;  %v335_v40 = vpack.c.bf16 %v65_v37, %v61_v36  ;;  %v367_v44 = vpack.c.bf16 %v67_v41, %v63_v38  ;;  %v62_v45 = vld [vmem:[%s638_s1 + $0xd0] sm:$0xff]  ;;  %v69_v47 = vld [vmem:[%s638_s1 + $0x108] sm:$0xff]  ;;  %v71_v49 = vld [vmem:[%s638_s1 + $0x118] sm:$0xff]  ;;  %v337_v51 = vpack.c.bf16 %v64_v43, %v60_v42  ;;  %v283_v36 = vlaneseq }
   0xc   :  { %364 = vmatprep.subr.bf16.mxu1 %v363_v31  ;;  %v66_v46 = vld [vmem:[%s638_s1 + $0xf0] sm:$0xff]  ;;  %v73_v48 = vld [vmem:[%s638_s1 + $0x128] sm:$0xff]  ;;  %v75_v50 = vld [vmem:[%s638_s1 + $0x138] sm:$0xff] }
   0xd   :  { %v369_v52 = vpack.c.bf16 %v66_v46, %v62_v45  ;;  %v339_v53 = vpack.c.bf16 %v73_v48, %v69_v47  ;;  %v68_v54 = vld [vmem:[%s638_s1 + $0x100] sm:$0xff]  ;;  %v70_v56 = vld [vmem:[%s638_s1 + $0x110] sm:$0xff]  ;;  %v371_v57 = vpack.c.bf16 %v75_v50, %v71_v49  ;;  %v77_v59 = vld [vmem:[%s638_s1 + $0x148] sm:$0xff]  ;;  %v284_v37 = vshrl.u32 %v283_v36, 7 }
   0xe   :  { %334 = vmatpush1.bf16.msra.mxu0 %v333_v35  ;;  %v72_v55 = vld [vmem:[%s638_s1 + $0x120] sm:$0xff]  ;;  %v74_v58 = vld [vmem:[%s638_s1 + $0x130] sm:$0xff]  ;;  %v81_v60 = vld [vmem:[%s638_s1 + $0x168] sm:$0xff] }
   0xf   :  { %366 = vmatpush1.bf16.msra.mxu1 %v365_v39  ;;  %336 = vmatprep.subr.bf16.mxu0 %v335_v40  ;;  %v79_v61 = vld [vmem:[%s638_s1 + $0x158] sm:$0xff]  ;;  %v341_v63 = vpack.c.bf16 %v72_v55, %v68_v54  ;;  %v373_v0 = vpack.c.bf16 %v74_v58, %v70_v56  ;;  %v343_v1 = vpack.c.bf16 %v81_v60, %v77_v59  ;;  %v76_v2 = vld [vmem:[%s638_s1 + $0x140] sm:$0xff]  ;;  %v78_v5 = vld [vmem:[%s638_s1 + $0x150] sm:$0xff]  ;;  %v285_v38 = vsub.s32 0, %v284_v37 }
  0x10   :  { %368 = vmatprep.subr.bf16.mxu1 %v367_v44  ;;  %v83_v62 = vld [vmem:[%s638_s1 + $0x178] sm:$0xff]  ;;  %v80_v4 = vld [vmem:[%s638_s1 + $0x160] sm:$0xff]  ;;  %v82_v7 = vld [vmem:[%s638_s1 + $0x170] sm:$0xff]  ;;  %v293_v40 = vsub.s32 2, %v284_v37  ;;  %v289_v41 = vsub.s32 1, %v284_v37  ;;  %v297_v42 = vsub.s32 3, %v284_v37 }
  0x11   :  { %v375_v6 = vpack.c.bf16 %v83_v62, %v79_v61  ;;  %v85_v8 = vld [vmem:[%s638_s1 + $0x188] sm:$0xff]  ;;  %v87_v10 = vld [vmem:[%s638_s1 + $0x198] sm:$0xff]  ;;  %v345_v12 = vpack.c.bf16 %v80_v4, %v76_v2  ;;  %v377_v13 = vpack.c.bf16 %v82_v7, %v78_v5  ;;  %v84_v15 = vld [vmem:[%s638_s1 + $0x180] sm:$0xff] }
  0x12   :  { %338 = vmatpush1.bf16.msra.mxu0 %v337_v51  ;;  %v89_v9 = vld [vmem:[%s638_s1 + $0x1a8] sm:$0xff]  ;;  %v91_v11 = vld [vmem:[%s638_s1 + $0x1b8] sm:$0xff]  ;;  %v88_v16 = vld [vmem:[%s638_s1 + $0x1a0] sm:$0xff] }
  0x13   :  { %370 = vmatpush1.bf16.msra.mxu1 %v369_v52  ;;  %340 = vmatprep.subr.bf16.mxu0 %v339_v53  ;;  %v347_v14 = vpack.c.bf16 %v89_v9, %v85_v8  ;;  %v86_v17 = vld [vmem:[%s638_s1 + $0x190] sm:$0xff]  ;;  %v379_v18 = vpack.c.bf16 %v91_v11, %v87_v10  ;;  %v93_v20 = vld [vmem:[%s638_s1 + $0x1c8] sm:$0xff]  ;;  %v95_v22 = vld [vmem:[%s638_s1 + $0x1d8] sm:$0xff]  ;;  %v349_v24 = vpack.c.bf16 %v88_v16, %v84_v15 }
  0x14   :  { %372 = vmatprep.subr.bf16.mxu1 %v371_v57  ;;  %v90_v19 = vld [vmem:[%s638_s1 + $0x1b0] sm:$0xff]  ;;  %v97_v21 = vld [vmem:[%s638_s1 + $0x1e8] sm:$0xff]  ;;  %v99_v23 = vld [vmem:[%s638_s1 + $0x1f8] sm:$0xff] }
  0x15   :  { %v381_v25 = vpack.c.bf16 %v90_v19, %v86_v17  ;;  %v351_v26 = vpack.c.bf16 %v97_v21, %v93_v20  ;;  %v92_v27 = vld [vmem:[%s638_s1 + $0x1c0] sm:$0xff]  ;;  %v383_v29 = vpack.c.bf16 %v99_v23, %v95_v22  ;;  %v94_v30 = vld [vmem:[%s638_s1 + $0x1d0] sm:$0xff]  ;;  %v35_v35 = vld [vmem:[%s639_s0 + $0x8] sm:$0xff] }
  0x16   :  { %342 = vmatpush1.bf16.msra.mxu0 %v341_v63  ;;  %v96_v28 = vld [vmem:[%s638_s1 + $0x1e0] sm:$0xff]  ;;  %v98_v31 = vld [vmem:[%s638_s1 + $0x1f0] sm:$0xff] }
  0x17   :  { %374 = vmatpush1.bf16.msra.mxu1 %v373_v0  ;;  %344 = vmatprep.subr.bf16.mxu0 %v343_v1  ;;  %v353_v32 = vpack.c.bf16 %v96_v28, %v92_v27  ;;  %v385_v33 = vpack.c.bf16 %v98_v31, %v94_v30  ;;  %v34_v34 = vld [vmem:[%s639_s0] sm:$0xff] }
  0x18   :  { %376 = vmatprep.subr.bf16.mxu1 %v375_v6  ;;  %v281_v39 = vld [vmem:[%s640_s2] sm:$0xf] }
  0x19   :  { %v286_v43 = vrot.slane %v281_v39, %v285_v38  ;;  %v294_v44 = vrot.slane %v281_v39, %v293_v40  ;;  %v290_v45 = vrot.slane %v281_v39, %v289_v41  ;;  %v298_v46 = vrot.slane %v281_v39, %v297_v42 }
  0x1a   :  { %346 = vmatpush1.bf16.msra.mxu0 %v345_v12 }
  0x1b   :  { %378 = vmatpush1.bf16.msra.mxu1 %v377_v13  ;;  %348 = vmatprep.subr.bf16.mxu0 %v347_v14 }
  0x1c   :  { %380 = vmatprep.subr.bf16.mxu1 %v379_v18 }
  0x1e   :  { %350 = vmatpush1.bf16.msra.mxu0 %v349_v24 }
  0x1f   :  { %382 = vmatpush1.bf16.msra.mxu1 %v381_v25  ;;  %352 = vmatprep.subr.bf16.mxu0 %v351_v26 }
  0x20   :  { %384 = vmatprep.subr.bf16.mxu1 %v383_v29 }
  0x22   :  { %354 = vmatpush1.bf16.msra.mxu0 %v353_v32 }
  0x23   :  { %386 = vmatpush1.bf16.msra.mxu1 %v385_v33 }
  0x25   :  { %165 = vmatmul.mubr.f32.vlgmr.msra.gmra.mrb[0].mxu0 %v34_v34 }
  0x26   :  { %242 = vmatmul.mubr.f32.vlgmr.msra.gmra.mrb[0].mxu1 %v34_v34  ;;  %170 = vmatprep.mubr.f32.mxu0 %v388_v3 }
  0x27   :  { %247 = vmatprep.mubr.f32.mxu1 %v388_v3 }
  0x29   :  { %171 = vmatmul.mubr.f32.gmra.mrb[2].mxu0 %v35_v35 }
  0x2a   :  { %248 = vmatmul.mubr.f32.gmra.mrb[2].mxu1 %v35_v35 }
  0xf8   :  { %v166_v47 = vpop.f32.mrb[0].mxu0 }
  0xf9   :  { %v303_v48 = vadd.f32 %v286_v43, %v166_v47  ;;  %v243_v49 = vpop.f32.mrb[0].mxu1  ;;  %v168_v3 = vpop.f32.mrb[1].mxu0 }
  0xfa   :  { %v305_v50 = vadd.f32 %v294_v44, %v243_v49  ;;  %v304_v51 = vadd.f32 %v290_v45, %v168_v3  ;;  %v245_v52 = vpop.f32.mrb[1].mxu1 }
  0xfb   :  { %311 = vst [vmem:[%s641_s3] sm:$0xff] %v303_v48  ;;  %v306_v53 = vadd.f32 %v298_v46, %v245_v52 }
  0xfc   :  { %313 = vst [vmem:[%s641_s3 + $0x10] sm:$0xff] %v305_v50  ;;  %312 = vst [vmem:[%s641_s3 + $0x8] sm:$0xff] %v304_v51  ;;  %v172_v54 = vpop.f32.mrb[2].mxu0 }
  0xfd   :  { %314 = vst [vmem:[%s641_s3 + $0x18] sm:$0xff] %v306_v53  ;;  %v307_v55 = vadd.f32 %v286_v43, %v172_v54  ;;  %v249_v56 = vpop.f32.mrb[2].mxu1  ;;  %v174_v57 = vpop.f32.mrb[3].mxu0 }
  0xfe   :  { %v309_v58 = vadd.f32 %v294_v44, %v249_v56  ;;  %v308_v59 = vadd.f32 %v290_v45, %v174_v57  ;;  %v251_v60 = vpop.f32.mrb[3].mxu1 }
  0xff   :  { %315 = vst [vmem:[%s641_s3 + $0x20] sm:$0xff] %v307_v55  ;;  %v310_v61 = vadd.f32 %v298_v46, %v251_v60 }
 0x100   :  { %317 = vst [vmem:[%s641_s3 + $0x30] sm:$0xff] %v309_v58  ;;  %316 = vst [vmem:[%s641_s3 + $0x28] sm:$0xff] %v308_v59 }
 0x101   :  { %318 = vst [vmem:[%s641_s3 + $0x38] sm:$0xff] %v310_v61 }

// kernel: lstm_forward.9
= control target key start
LH: loop header
LB: loop body
LE: loop exit
PB: predicated region body
PF: predicated region fallthrough
CT: control target
= control target key end

     0   :  { %s308_s1 = inlined_call_operand.vmem [shape: f32[128,128], index: 1, kind: input, shape index: {}]   ;;  %s309_s0 = inlined_call_operand.vmem [shape: f32[16,128], index: 0, kind: input, shape index: {}]   ;;  %s310_s2 = inlined_call_operand.vmem [shape: f32[1,128], index: 2, kind: input, shape index: {}]   ;;  %s311_s3 = inlined_call_operand.vmem [shape: f32[16,128], index: 3, kind: output, shape index: {}]  }
   0x1   :  { %v24_v0 = vld [vmem:[%s308_s1] sm:$0xff]  ;;  %v25_v1 = vld [vmem:[%s308_s1 + $0x8] sm:$0xff]  ;;  %v26_v2 = vld [vmem:[%s308_s1 + $0x10] sm:$0xff] }
   0x2   :  { %v193_v3 = vpack.c.bf16 %v25_v1, %v24_v0  ;;  %v27_v4 = vld [vmem:[%s308_s1 + $0x18] sm:$0xff]  ;;  %v28_v6 = vld [vmem:[%s308_s1 + $0x20] sm:$0xff]  ;;  %v29_v7 = vld [vmem:[%s308_s1 + $0x28] sm:$0xff] }
   0x3   :  { %v197_v5 = vpack.c.bf16 %v27_v4, %v26_v2  ;;  %v201_v8 = vpack.c.bf16 %v29_v7, %v28_v6  ;;  %v22_v9 = vld [vmem:[%s309_s0] sm:$0xff]  ;;  %v30_v10 = vld [vmem:[%s308_s1 + $0x30] sm:$0xff]  ;;  %v31_v11 = vld [vmem:[%s308_s1 + $0x38] sm:$0xff] }
   0x4   :  { %194 = vmatprep.subr.bf16.mxu0 %v193_v3  ;;  %190 = vmatprep.mubr.f32.mxu0 %v22_v9  ;;  %v205_v12 = vpack.c.bf16 %v31_v11, %v30_v10  ;;  %v32_v13 = vld [vmem:[%s308_s1 + $0x40] sm:$0xff]  ;;  %v33_v14 = vld [vmem:[%s308_s1 + $0x48] sm:$0xff]  ;;  %v34_v16 = vld [vmem:[%s308_s1 + $0x50] sm:$0xff] }
   0x5   :  { %196 = vmatpush3.bf16.msra.mxu0 %v193_v3  ;;  %v209_v15 = vpack.c.bf16 %v33_v14, %v32_v13  ;;  %v35_v17 = vld [vmem:[%s308_s1 + $0x58] sm:$0xff]  ;;  %v36_v19 = vld [vmem:[%s308_s1 + $0x60] sm:$0xff]  ;;  %v37_v20 = vld [vmem:[%s308_s1 + $0x68] sm:$0xff] }
   0x6   :  { %198 = vmatprep.subr.bf16.mxu0 %v197_v5  ;;  %v213_v18 = vpack.c.bf16 %v35_v17, %v34_v16  ;;  %v217_v21 = vpack.c.bf16 %v37_v20, %v36_v19  ;;  %v38_v22 = vld [vmem:[%s308_s1 + $0x70] sm:$0xff]  ;;  %v39_v23 = vld [vmem:[%s308_s1 + $0x78] sm:$0xff]  ;;  %v23_v25 = vld [vmem:[%s309_s0 + $0x8] sm:$0xff] }
   0x7   :  { %v221_v24 = vpack.c.bf16 %v39_v23, %v38_v22  ;;  %v139_v26 = vld [vmem:[%s310_s2] ss:$0 sm:$0xff] }
   0x9   :  { %200 = vmatpush3.bf16.msra.mxu0 %v197_v5 }
   0xa   :  { %202 = vmatprep.subr.bf16.mxu0 %v201_v8 }
   0xd   :  { %204 = vmatpush3.bf16.msra.mxu0 %v201_v8 }
   0xe   :  { %206 = vmatprep.subr.bf16.mxu0 %v205_v12 }
  0x11   :  { %208 = vmatpush3.bf16.msra.mxu0 %v205_v12 }
  0x12   :  { %210 = vmatprep.subr.bf16.mxu0 %v209_v15 }
  0x15   :  { %212 = vmatpush3.bf16.msra.mxu0 %v209_v15 }
  0x16   :  { %214 = vmatprep.subr.bf16.mxu0 %v213_v18 }
  0x19   :  { %216 = vmatpush3.bf16.msra.mxu0 %v213_v18 }
  0x1a   :  { %218 = vmatprep.subr.bf16.mxu0 %v217_v21 }
  0x1d   :  { %220 = vmatpush3.bf16.msra.mxu0 %v217_v21 }
  0x1e   :  { %222 = vmatprep.subr.bf16.mxu0 %v221_v24 }
  0x21   :  { %224 = vmatpush3.bf16.msra.mxu0 %v221_v24 }
  0x24   :  { %191 = vmatmul.mubr.f32.vlgmr.msra.gmra.mrb[0].mxu0 %v23_v25 }
  0xf7   :  { %v192_v27 = vpop.f32.mrb[0].mxu0 }
  0xf8   :  { %v132_v28 = vadd.f32 %v192_v27, %v139_v26  ;;  %v106_v29 = vpop.f32.mrb[1].mxu0 }
  0xf9   :  { %v131_v30 = vadd.f32 %v139_v26, %v106_v29 }
  0xfa   :  { %134 = vst [vmem:[%s311_s3 + $0x8] sm:$0xff] %v132_v28 }
  0xfb   :  { %133 = vst [vmem:[%s311_s3] sm:$0xff] %v131_v30 }

// kernel: lstm_forward.6
= control target key start
LH: loop header
LB: loop body
LE: loop exit
PB: predicated region body
PF: predicated region fallthrough
CT: control target
= control target key end

     0   :  { %s3807_s0 = inlined_call_operand.vmem [shape: f32[8,2,512], index: 0, kind: input, shape index: {}]   ;;  %s3808_s1 = inlined_call_operand.vmem [shape: f32[128,512], index: 1, kind: input, shape index: {}]   ;;  %s3809_s2 = inlined_call_operand.vmem [shape: f32[8,2,128], index: 2, kind: output, shape index: {}]  }
   0x1   :  { %v3022_v0 = vld [vmem:[%s3808_s1] sm:$0xff]  ;;  %v3027_v1 = vld [vmem:[%s3808_s1 + $0x8] sm:$0xff]  ;;  %v3032_v2 = vld [vmem:[%s3808_s1 + $0x10] sm:$0xff] }
   0x2   :  { %v3037_v3 = vld [vmem:[%s3808_s1 + $0x18] sm:$0xff]  ;;  %v3042_v4 = vld [vmem:[%s3808_s1 + $0x20] sm:$0xff]  ;;  %v55_v5 = vld [vmem:[%s3808_s1 + $0x28] sm:$0xff] }
   0x3   :  { %v57_v6 = vld [vmem:[%s3808_s1 + $0x30] sm:$0xff]  ;;  %v59_v7 = vld [vmem:[%s3808_s1 + $0x38] sm:$0xff]  ;;  %v3056_v8 = vld [vmem:[%s3808_s1 + $0x40] sm:$0xff] }
   0x4   :  { %v63_v9 = vld [vmem:[%s3808_s1 + $0x48] sm:$0xff]  ;;  %v3064_v10 = vld [vmem:[%s3808_s1 + $0x50] sm:$0xff]  ;;  %v67_v11 = vld [vmem:[%s3808_s1 + $0x58] sm:$0xff] }
   0x5   :  { %v3072_v12 = vld [vmem:[%s3808_s1 + $0x60] sm:$0xff]  ;;  %v71_v13 = vld [vmem:[%s3808_s1 + $0x68] sm:$0xff]  ;;  %v3080_v14 = vld [vmem:[%s3808_s1 + $0x70] sm:$0xff] }
   0x6   :  { %v75_v15 = vld [vmem:[%s3808_s1 + $0x78] sm:$0xff]  ;;  %v3088_v16 = vld [vmem:[%s3808_s1 + $0x80] sm:$0xff]  ;;  %v3093_v17 = vld [vmem:[%s3808_s1 + $0x88] sm:$0xff] }
   0x7   :  { %v3098_v18 = vld [vmem:[%s3808_s1 + $0x90] sm:$0xff]  ;;  %v3103_v19 = vld [vmem:[%s3808_s1 + $0x98] sm:$0xff]  ;;  %v3108_v20 = vld [vmem:[%s3808_s1 + $0xa0] sm:$0xff] }
   0x8   :  { %v3113_v21 = vld [vmem:[%s3808_s1 + $0xa8] sm:$0xff]  ;;  %v3118_v22 = vld [vmem:[%s3808_s1 + $0xb0] sm:$0xff]  ;;  %v91_v23 = vld [vmem:[%s3808_s1 + $0xb8] sm:$0xff] }
   0x9   :  { %v3126_v24 = vld [vmem:[%s3808_s1 + $0xc0] sm:$0xff]  ;;  %v3131_v25 = vld [vmem:[%s3808_s1 + $0xc8] sm:$0xff]  ;;  %v3136_v26 = vld [vmem:[%s3808_s1 + $0xd0] sm:$0xff] }
   0xa   :  { %v3141_v27 = vld [vmem:[%s3808_s1 + $0xd8] sm:$0xff]  ;;  %v3146_v28 = vld [vmem:[%s3808_s1 + $0xe0] sm:$0xff]  ;;  %v3151_v29 = vld [vmem:[%s3808_s1 + $0xe8] sm:$0xff] }
   0xb   :  { %v3156_v30 = vld [vmem:[%s3808_s1 + $0xf0] sm:$0xff]  ;;  %v3161_v31 = vld [vmem:[%s3808_s1 + $0xf8] sm:$0xff]  ;;  %v3166_v32 = vld [vmem:[%s3808_s1 + $0x100] sm:$0xff] }
   0xc   :  { %v3171_v33 = vld [vmem:[%s3808_s1 + $0x108] sm:$0xff]  ;;  %v3176_v34 = vld [vmem:[%s3808_s1 + $0x110] sm:$0xff]  ;;  %v3181_v35 = vld [vmem:[%s3808_s1 + $0x118] sm:$0xff] }
   0xd   :  { %v3186_v36 = vld [vmem:[%s3808_s1 + $0x120] sm:$0xff]  ;;  %v3191_v37 = vld [vmem:[%s3808_s1 + $0x128] sm:$0xff]  ;;  %v3196_v38 = vld [vmem:[%s3808_s1 + $0x130] sm:$0xff] }
   0xe   :  { %v3201_v39 = vld [vmem:[%s3808_s1 + $0x138] sm:$0xff]  ;;  %v3206_v40 = vld [vmem:[%s3808_s1 + $0x140] sm:$0xff]  ;;  %v3211_v41 = vld [vmem:[%s3808_s1 + $0x148] sm:$0xff] }
   0xf   :  { %v3216_v42 = vld [vmem:[%s3808_s1 + $0x150] sm:$0xff]  ;;  %v3221_v43 = vld [vmem:[%s3808_s1 + $0x158] sm:$0xff]  ;;  %v3226_v44 = vld [vmem:[%s3808_s1 + $0x160] sm:$0xff] }
  0x10   :  { %v3231_v45 = vld [vmem:[%s3808_s1 + $0x168] sm:$0xff]  ;;  %v3236_v46 = vld [vmem:[%s3808_s1 + $0x170] sm:$0xff]  ;;  %v3241_v47 = vld [vmem:[%s3808_s1 + $0x178] sm:$0xff] }
  0x11   :  { %v3246_v48 = vld [vmem:[%s3808_s1 + $0x180] sm:$0xff]  ;;  %v3251_v49 = vld [vmem:[%s3808_s1 + $0x188] sm:$0xff]  ;;  %v3256_v50 = vld [vmem:[%s3808_s1 + $0x190] sm:$0xff] }
  0x12   :  { %v3261_v51 = vld [vmem:[%s3808_s1 + $0x198] sm:$0xff]  ;;  %v3266_v52 = vld [vmem:[%s3808_s1 + $0x1a0] sm:$0xff]  ;;  %v3271_v53 = vld [vmem:[%s3808_s1 + $0x1a8] sm:$0xff] }
  0x13   :  { %v3276_v54 = vld [vmem:[%s3808_s1 + $0x1b0] sm:$0xff]  ;;  %v3281_v55 = vld [vmem:[%s3808_s1 + $0x1b8] sm:$0xff]  ;;  %v3286_v56 = vld [vmem:[%s3808_s1 + $0x1c0] sm:$0xff] }
  0x14   :  { %3810 = vst [vmem:[#allocation8_spill] sm:$0xff] %v3286_v56  ;;  %v3291_v57 = vld [vmem:[%s3808_s1 + $0x1c8] sm:$0xff]  ;;  %v3296_v58 = vld [vmem:[%s3808_s1 + $0x1d0] sm:$0xff]  ;;  %v3301_v59 = vld [vmem:[%s3808_s1 + $0x1d8] sm:$0xff] }
  0x15   :  { %3811 = vst [vmem:[#allocation9_spill] sm:$0xff] %v3296_v58  ;;  %3812 = vst [vmem:[#allocation10_spill] sm:$0xff] %v3301_v59  ;;  %v3306_v60 = vld [vmem:[%s3808_s1 + $0x1e0] sm:$0xff]  ;;  %v3311_v61 = vld [vmem:[%s3808_s1 + $0x1e8] sm:$0xff] }
  0x16   :  { %3813 = vst [vmem:[#allocation11_spill] sm:$0xff] %v3306_v60  ;;  %3814 = vst [vmem:[#allocation12_spill] sm:$0xff] %v3311_v61  ;;  %v3316_v62 = vld [vmem:[%s3808_s1 + $0x1f0] sm:$0xff]  ;;  %v3321_v63 = vld [vmem:[%s3808_s1 + $0x1f8] sm:$0xff] }
  0x17   :  { %3815 = vst [vmem:[#allocation13_spill] sm:$0xff] %v3316_v62 }
  0x18   :  { %180 = vsyncadd [#allocation5], 8192  ;;  %v3324_v58 = vpack.c.bf16 %v55_v5, %v3027_v1  ;;  %v3327_v60 = vpack.c.bf16 %v59_v7, %v3037_v3  ;;  %v3331_v56 = vpack.c.bf16 %v3042_v4, %v3022_v0  ;;  %v3334_v59 = vpack.c.bf16 %v57_v6, %v3032_v2 }
  0x19   :  { %3000 = dma.done.wait [#allocation5], 8192 }
  0x1a   :  { %3001 = vsyncadd [#allocation5], 4294959104  ;;  %v3336_v62 = vpack.c.bf16 %v71_v13, %v63_v9  ;;  %v3338_v61 = vpack.c.bf16 %v75_v15, %v67_v11  ;;  %2359 = vmatprep.subr.bf16.mxu0 %v3324_v58  ;;  %2391 = vmatprep.subr.bf16.mxu1 %v3327_v60  ;;  %v3346_v0 = vpack.c.bf16 %v3072_v12, %v3056_v8  ;;  %v3002_v2 = vmov 0.0  }
  0x1b   :  { %2361 = vmatpush1.bf16.msra.mxu0 %v3331_v56  ;;  %2393 = vmatpush1.bf16.msra.mxu1 %v3334_v59  ;;  %v3350_v1 = vpack.c.bf16 %v3080_v14, %v3064_v10  ;;  %185 = vst [vmem:[#allocation2] sm:$0x3] %v3002_v2  ;;  %186 = vst [vmem:[#allocation3] sm:$0x3] %v3002_v2  ;;  %v3358_v3 = vpack.c.bf16 %v3113_v21, %v3093_v17 }
  0x1c   :  { %2363 = vmatprep.subr.bf16.mxu0 %v3336_v62  ;;  %2395 = vmatprep.subr.bf16.mxu1 %v3338_v61  ;;  %v3361_v4 = vpack.c.bf16 %v91_v23, %v3103_v19  ;;  %v3369_v5 = vpack.c.bf16 %v3108_v20, %v3088_v16  ;;  %v3373_v6 = vpack.c.bf16 %v3118_v22, %v3098_v18 }
  0x1d   :  { %318 = vmatprep.mubr.f32.mxu0 %v3002_v2  ;;  %389 = vmatprep.mubr.f32.mxu1 %v3002_v2  ;;  %v3379_v7 = vpack.c.bf16 %v3151_v29, %v3131_v25  ;;  %v3383_v8 = vpack.c.bf16 %v3161_v31, %v3141_v27  ;;  %v3389_v9 = vpack.c.bf16 %v3146_v28, %v3126_v24  ;;  %v3816_v23 = vld [vmem:[#allocation12_spill] sm:$0xff]  ;;  %v3817_v25 = vld [vmem:[#allocation10_spill] sm:$0xff]  ;;  %v3819_v28 = vld [vmem:[#allocation11_spill] sm:$0xff] }
  0x1e   :  { %v3393_v10 = vpack.c.bf16 %v3156_v30, %v3136_v26  ;;  %v3399_v11 = vpack.c.bf16 %v3191_v37, %v3171_v33  ;;  %v3403_v12 = vpack.c.bf16 %v3201_v39, %v3181_v35  ;;  %v3409_v13 = vpack.c.bf16 %v3186_v36, %v3166_v32  ;;  %v3818_v27 = vld [vmem:[#allocation8_spill] sm:$0xff]  ;;  %v3820_v30 = vld [vmem:[#allocation9_spill] sm:$0xff] }
  0x1f   :  { %2365 = vmatpush1.bf16.msra.mxu0 %v3346_v0  ;;  %2397 = vmatpush1.bf16.msra.mxu1 %v3350_v1  ;;  %v3413_v14 = vpack.c.bf16 %v3196_v38, %v3176_v34  ;;  %v3419_v15 = vpack.c.bf16 %v3231_v45, %v3211_v41  ;;  %v3423_v16 = vpack.c.bf16 %v3241_v47, %v3221_v43  ;;  %v3821_v31 = vld [vmem:[#allocation13_spill] sm:$0xff]  ;;  %v3003_v34 = vmov 1983009808  }
  0x20   :  { %2367 = vmatprep.subr.bf16.mxu0 %v3358_v3  ;;  %2399 = vmatprep.subr.bf16.mxu1 %v3361_v4  ;;  %v3429_v17 = vpack.c.bf16 %v3226_v44, %v3206_v40  ;;  %v3433_v18 = vpack.c.bf16 %v3236_v46, %v3216_v42  ;;  %v3439_v19 = vpack.c.bf16 %v3271_v53, %v3251_v49  ;;  %v403_v35 = vunpack.c.l.s4 %v3003_v34 }
  0x21   :  { %v3443_v20 = vpack.c.bf16 %v3281_v55, %v3261_v51  ;;  %v3449_v21 = vpack.c.bf16 %v3266_v52, %v3246_v48  ;;  %v3453_v22 = vpack.c.bf16 %v3276_v54, %v3256_v50  ;;  %v3459_v24 = vpack.c.bf16 %v3816_v23, %v3291_v57  ;;  %v189_v48 = vld [vmem:[%s3807_s0] sm:$0xff] }
  0x22   :  { %v3463_v26 = vpack.c.bf16 %v3321_v63, %v3817_v25  ;;  %v3469_v29 = vpack.c.bf16 %v3819_v28, %v3818_v27  ;;  %v3473_v32 = vpack.c.bf16 %v3821_v31, %v3820_v30  ;;  %v187_v33 = vld [vmem:[#allocation2] sm:$0x3]  ;;  %v405_v36 = vlaneseq  ;;  %v188_v31 = vld [vmem:[#allocation3] sm:$0x3] }
  0x23   :  { %2369 = vmatpush1.bf16.msra.mxu0 %v3369_v5  ;;  %2401 = vmatpush1.bf16.msra.mxu1 %v3373_v6  ;;  %v404_v37 = vunpack.c.0.s8 %v403_v35 }
  0x24   :  { %2371 = vmatprep.subr.bf16.mxu0 %v3379_v7  ;;  %2403 = vmatprep.subr.bf16.mxu1 %v3383_v8  ;;  %v406_v38 = vshrl.u32 %v405_v36, 7 }
  0x26   :  { %v3515_v41 = vsub.s32 %v404_v37, %v406_v38 }
  0x27   :  { %2373 = vmatpush1.bf16.msra.mxu0 %v3389_v9  ;;  %2405 = vmatpush1.bf16.msra.mxu1 %v3393_v10 }
  0x28   :  { %2375 = vmatprep.subr.bf16.mxu0 %v3399_v11  ;;  %2407 = vmatprep.subr.bf16.mxu1 %v3403_v12 }
  0x2b   :  { %2377 = vmatpush1.bf16.msra.mxu0 %v3409_v13  ;;  %2409 = vmatpush1.bf16.msra.mxu1 %v3413_v14 }
  0x2c   :  { %2379 = vmatprep.subr.bf16.mxu0 %v3419_v15  ;;  %2411 = vmatprep.subr.bf16.mxu1 %v3423_v16 }
  0x2f   :  { %2381 = vmatpush1.bf16.msra.mxu0 %v3429_v17  ;;  %2413 = vmatpush1.bf16.msra.mxu1 %v3433_v18 }
  0x30   :  { %2383 = vmatprep.subr.bf16.mxu0 %v3439_v19  ;;  %2415 = vmatprep.subr.bf16.mxu1 %v3443_v20 }
  0x33   :  { %2385 = vmatpush1.bf16.msra.mxu0 %v3449_v21  ;;  %2417 = vmatpush1.bf16.msra.mxu1 %v3453_v22 }
  0x34   :  { %2387 = vmatprep.subr.bf16.mxu0 %v3459_v24  ;;  %2419 = vmatprep.subr.bf16.mxu1 %v3463_v26 }
  0x37   :  { %2389 = vmatpush1.bf16.msra.mxu0 %v3469_v29  ;;  %2421 = vmatpush1.bf16.msra.mxu1 %v3473_v32 }
  0x38   :  { %2423 = vmatprep.subr.bf16.mxu0 %v3324_v58  ;;  %2455 = vmatprep.subr.bf16.mxu1 %v3327_v60 }
  0x3a   :  { %319 = vmatmul.mubr.f32.vlgmr.msra.gmra.mrb[0].mxu0 %v187_v33  ;;  %390 = vmatmul.mubr.f32.vlgmr.msra.gmra.mrb[0].mxu1 %v187_v33 }
  0x3b   :  { %2425 = vmatpush1.bf16.msra.mxu0 %v3331_v56  ;;  %2457 = vmatpush1.bf16.msra.mxu1 %v3334_v59 }
  0x3c   :  { %2427 = vmatprep.subr.bf16.mxu0 %v3336_v62  ;;  %2459 = vmatprep.subr.bf16.mxu1 %v3338_v61 }
  0x3d   :  { %581 = vmatprep.mubr.f32.mxu0 %v3002_v2  ;;  %652 = vmatprep.mubr.f32.mxu1 %v3002_v2 }
  0x3f   :  { %2429 = vmatpush1.bf16.msra.mxu0 %v3346_v0  ;;  %2461 = vmatpush1.bf16.msra.mxu1 %v3350_v1 }
  0x40   :  { %2431 = vmatprep.subr.bf16.mxu0 %v3358_v3  ;;  %2463 = vmatprep.subr.bf16.mxu1 %v3361_v4 }
  0x43   :  { %2433 = vmatpush1.bf16.msra.mxu0 %v3369_v5  ;;  %2465 = vmatpush1.bf16.msra.mxu1 %v3373_v6 }
  0x44   :  { %2435 = vmatprep.subr.bf16.mxu0 %v3379_v7  ;;  %2467 = vmatprep.subr.bf16.mxu1 %v3383_v8 }
  0x47   :  { %2437 = vmatpush1.bf16.msra.mxu0 %v3389_v9  ;;  %2469 = vmatpush1.bf16.msra.mxu1 %v3393_v10 }
  0x48   :  { %2439 = vmatprep.subr.bf16.mxu0 %v3399_v11  ;;  %2471 = vmatprep.subr.bf16.mxu1 %v3403_v12 }
  0x4b   :  { %2441 = vmatpush1.bf16.msra.mxu0 %v3409_v13  ;;  %2473 = vmatpush1.bf16.msra.mxu1 %v3413_v14 }
  0x4c   :  { %2443 = vmatprep.subr.bf16.mxu0 %v3419_v15  ;;  %2475 = vmatprep.subr.bf16.mxu1 %v3423_v16 }
  0x4f   :  { %2445 = vmatpush1.bf16.msra.mxu0 %v3429_v17  ;;  %2477 = vmatpush1.bf16.msra.mxu1 %v3433_v18 }
  0x50   :  { %2447 = vmatprep.subr.bf16.mxu0 %v3439_v19  ;;  %2479 = vmatprep.subr.bf16.mxu1 %v3443_v20 }
  0x53   :  { %2449 = vmatpush1.bf16.msra.mxu0 %v3449_v21  ;;  %2481 = vmatpush1.bf16.msra.mxu1 %v3453_v22 }
  0x54   :  { %2451 = vmatprep.subr.bf16.mxu0 %v3459_v24  ;;  %2483 = vmatprep.subr.bf16.mxu1 %v3463_v26 }
  0x57   :  { %2453 = vmatpush1.bf16.msra.mxu0 %v3469_v29  ;;  %2485 = vmatpush1.bf16.msra.mxu1 %v3473_v32 }
  0x58   :  { %2487 = vmatprep.subr.bf16.mxu0 %v3324_v58  ;;  %2519 = vmatprep.subr.bf16.mxu1 %v3327_v60 }
 0x10d   :  { %v320_v39 = vpop.f32.mrb[0].mxu0  ;;  %v391_v40 = vpop.f32.mrb[0].mxu1 }
 0x10e   :  { %v322_v42 = vpop.f32.mrb[1].mxu0  ;;  %v393_v43 = vpop.f32.mrb[1].mxu1 }
 0x10f   :  { %v400_v44 = vcombine.low %v320_v39, %v322_v42  ;;  %v401_v45 = vcombine.low %v391_v40, %v393_v43 }
 0x111   :  { %v408_v46 = vrot.slane %v400_v44, %v3515_v41  ;;  %v415_v47 = vrot.slane %v401_v45, %v3515_v41 }
 0x113   :  { %v416_v49 = vcombine.low %v408_v46, %v415_v47 }
 0x115   :  { %v418_v50 = vadd.f32 %v416_v49, %v189_v48 }
 0x117   :  { %v2319_v51 = vmul.f32 -1.442695, %v418_v50  ;;  %v426_v52 = vrot.slane %v418_v50, 2  ;;  %v437_v54 = vrot.slane %v418_v50, 6  ;;  %v434_v63 = vrot.slane %v418_v50, 4 }
 0x119   :  { %2872 = vpow2.f32 %v2319_v51  ;;  %v2320_v53 = vmul.f32 -1.442695, %v426_v52  ;;  %v2321_v55 = vmul.f32 -1.442695, %v437_v54  ;;  %v2322_v51 = vld [vmem:[%s3807_s0 + $0x8] sm:$0xff] }
 0x11b   :  { %2874 = vpow2.f32 %v2320_v53 }
 0x11c   :  { %2876 = vpow2.f32 %v2321_v55 }
 0x123   :  { %v2873_v57 = vpop.eup %2872 }
 0x124   :  { %v422_v23 = vadd.f32 1.0, %v2873_v57 }
 0x125   :  { %v2875_v25 = vpop.eup %2874 }
 0x126   :  { %2878 = vrcp.f32 %v422_v23  ;;  %v431_v27 = vadd.f32 1.0, %v2875_v25  ;;  %v2877_v28 = vpop.eup %2876 }
 0x127   :  { %2880 = vtanh.f32 %v434_v63  ;;  %v442_v35 = vadd.f32 1.0, %v2877_v28 }
 0x128   :  { %2882 = vrcp.f32 %v431_v27 }
 0x129   :  { %2884 = vrcp.f32 %v442_v35 }
 0x130   :  { %v2879_v30 = vpop.eup %2878 }
 0x131   :  { %v2881_v33 = vpop.eup %2880 }
 0x132   :  { %v2883_v34 = vpop.eup %2882  ;;  %v446_v37 = vmul.f32 %v2881_v33, %v2879_v30 }
 0x133   :  { %v445_v36 = vmul.f32 %v2883_v34, %v188_v31  ;;  %v2885_v39 = vpop.eup %2884 }
 0x135   :  { %v3522_v38 = vadd.f32 %v446_v37, %v445_v36 }
 0x137   :  { %2886 = vtanh.f32 %v3522_v38 }
 0x141   :  { %v2887_v40 = vpop.eup %2886 }
 0x142   :  { %v449_v42 = vmul.f32 %v2887_v40, %v2885_v39 }
 0x144   :  { %450 = vst [vmem:[%s3809_s2] sm:$0x3] %v449_v42  ;;  %582 = vmatmul.mubr.f32.vlgmr.msra.gmra.mrb[2].mxu0 %v449_v42  ;;  %653 = vmatmul.mubr.f32.vlgmr.msra.gmra.mrb[2].mxu1 %v449_v42 }
 0x145   :  { %2489 = vmatpush1.bf16.msra.mxu0 %v3331_v56  ;;  %2521 = vmatpush1.bf16.msra.mxu1 %v3334_v59 }
 0x146   :  { %2491 = vmatprep.subr.bf16.mxu0 %v3336_v62  ;;  %2523 = vmatprep.subr.bf16.mxu1 %v3338_v61 }
 0x147   :  { %845 = vmatprep.mubr.f32.mxu0 %v3002_v2  ;;  %916 = vmatprep.mubr.f32.mxu1 %v3002_v2 }
 0x149   :  { %2493 = vmatpush1.bf16.msra.mxu0 %v3346_v0  ;;  %2525 = vmatpush1.bf16.msra.mxu1 %v3350_v1 }
 0x14a   :  { %2495 = vmatprep.subr.bf16.mxu0 %v3358_v3  ;;  %2527 = vmatprep.subr.bf16.mxu1 %v3361_v4 }
 0x14d   :  { %2497 = vmatpush1.bf16.msra.mxu0 %v3369_v5  ;;  %2529 = vmatpush1.bf16.msra.mxu1 %v3373_v6 }
 0x14e   :  { %2499 = vmatprep.subr.bf16.mxu0 %v3379_v7  ;;  %2531 = vmatprep.subr.bf16.mxu1 %v3383_v8 }
 0x151   :  { %2501 = vmatpush1.bf16.msra.mxu0 %v3389_v9  ;;  %2533 = vmatpush1.bf16.msra.mxu1 %v3393_v10 }
 0x152   :  { %2503 = vmatprep.subr.bf16.mxu0 %v3399_v11  ;;  %2535 = vmatprep.subr.bf16.mxu1 %v3403_v12 }
 0x155   :  { %2505 = vmatpush1.bf16.msra.mxu0 %v3409_v13  ;;  %2537 = vmatpush1.bf16.msra.mxu1 %v3413_v14 }
 0x156   :  { %2507 = vmatprep.subr.bf16.mxu0 %v3419_v15  ;;  %2539 = vmatprep.subr.bf16.mxu1 %v3423_v16 }
 0x159   :  { %2509 = vmatpush1.bf16.msra.mxu0 %v3429_v17  ;;  %2541 = vmatpush1.bf16.msra.mxu1 %v3433_v18 }
 0x15a   :  { %2511 = vmatprep.subr.bf16.mxu0 %v3439_v19  ;;  %2543 = vmatprep.subr.bf16.mxu1 %v3443_v20 }
 0x15d   :  { %2513 = vmatpush1.bf16.msra.mxu0 %v3449_v21  ;;  %2545 = vmatpush1.bf16.msra.mxu1 %v3453_v22 }
 0x15e   :  { %2515 = vmatprep.subr.bf16.mxu0 %v3459_v24  ;;  %2547 = vmatprep.subr.bf16.mxu1 %v3463_v26 }
 0x161   :  { %2517 = vmatpush1.bf16.msra.mxu0 %v3469_v29  ;;  %2549 = vmatpush1.bf16.msra.mxu1 %v3473_v32 }
 0x162   :  { %2551 = vmatprep.subr.bf16.mxu0 %v3324_v58  ;;  %2583 = vmatprep.subr.bf16.mxu1 %v3327_v60 }
 0x217   :  { %v583_v43 = vpop.f32.mrb[2].mxu0  ;;  %v654_v44 = vpop.f32.mrb[2].mxu1 }
 0x218   :  { %v585_v45 = vpop.f32.mrb[3].mxu0  ;;  %v656_v46 = vpop.f32.mrb[3].mxu1 }
 0x219   :  { %v663_v47 = vcombine.low %v583_v43, %v585_v45  ;;  %v664_v48 = vcombine.low %v654_v44, %v656_v46 }
 0x21b   :  { %v671_v49 = vrot.slane %v663_v47, %v3515_v41  ;;  %v678_v50 = vrot.slane %v664_v48, %v3515_v41 }
 0x21d   :  { %v679_v52 = vcombine.low %v671_v49, %v678_v50 }
 0x21f   :  { %v681_v53 = vadd.f32 %v2322_v51, %v679_v52 }
 0x221   :  { %v2323_v54 = vmul.f32 -1.442695, %v681_v53  ;;  %v689_v55 = vrot.slane %v681_v53, 2  ;;  %v700_v63 = vrot.slane %v681_v53, 6  ;;  %v697_v27 = vrot.slane %v681_v53, 4  ;;  %v2327_v53 = vld [vmem:[%s3807_s0 + $0x10] sm:$0xff] }
 0x223   :  { %2888 = vpow2.f32 %v2323_v54  ;;  %v2324_v57 = vmul.f32 -1.442695, %v689_v55  ;;  %v2325_v23 = vmul.f32 -1.442695, %v700_v63 }
 0x225   :  { %2890 = vpow2.f32 %v2324_v57 }
 0x226   :  { %2892 = vpow2.f32 %v2325_v23 }
 0x22d   :  { %v2889_v25 = vpop.eup %2888 }
 0x22e   :  { %v685_v28 = vadd.f32 1.0, %v2889_v25 }
 0x22f   :  { %v2891_v30 = vpop.eup %2890 }
 0x230   :  { %2894 = vrcp.f32 %v685_v28  ;;  %v694_v31 = vadd.f32 1.0, %v2891_v30  ;;  %v2893_v33 = vpop.eup %2892 }
 0x231   :  { %2896 = vtanh.f32 %v697_v27  ;;  %v705_v37 = vadd.f32 1.0, %v2893_v33 }
 0x232   :  { %2898 = vrcp.f32 %v694_v31 }
 0x233   :  { %2900 = vrcp.f32 %v705_v37 }
 0x23a   :  { %v2895_v34 = vpop.eup %2894 }
 0x23b   :  { %v2897_v35 = vpop.eup %2896 }
 0x23c   :  { %v2899_v36 = vpop.eup %2898  ;;  %v709_v40 = vmul.f32 %v2897_v35, %v2895_v34 }
 0x23d   :  { %v708_v39 = vmul.f32 %v2899_v36, %v3522_v38  ;;  %v2901_v43 = vpop.eup %2900 }
 0x23f   :  { %v3568_v42 = vadd.f32 %v709_v40, %v708_v39 }
 0x241   :  { %2902 = vtanh.f32 %v3568_v42 }
 0x24b   :  { %v2903_v44 = vpop.eup %2902 }
 0x24c   :  { %v712_v45 = vmul.f32 %v2903_v44, %v2901_v43 }
 0x24e   :  { %2326 = vst [vmem:[%s3809_s2 + $0x2] sm:$0x3] %v712_v45  ;;  %846 = vmatmul.mubr.f32.vlgmr.msra.gmra.mrb[4].mxu0 %v712_v45  ;;  %917 = vmatmul.mubr.f32.vlgmr.msra.gmra.mrb[4].mxu1 %v712_v45 }
 0x24f   :  { %2553 = vmatpush1.bf16.msra.mxu0 %v3331_v56  ;;  %2585 = vmatpush1.bf16.msra.mxu1 %v3334_v59 }
 0x250   :  { %2555 = vmatprep.subr.bf16.mxu0 %v3336_v62  ;;  %2587 = vmatprep.subr.bf16.mxu1 %v3338_v61 }
 0x251   :  { %1109 = vmatprep.mubr.f32.mxu0 %v3002_v2  ;;  %1180 = vmatprep.mubr.f32.mxu1 %v3002_v2 }
 0x253   :  { %2557 = vmatpush1.bf16.msra.mxu0 %v3346_v0  ;;  %2589 = vmatpush1.bf16.msra.mxu1 %v3350_v1 }
 0x254   :  { %2559 = vmatprep.subr.bf16.mxu0 %v3358_v3  ;;  %2591 = vmatprep.subr.bf16.mxu1 %v3361_v4 }
 0x257   :  { %2561 = vmatpush1.bf16.msra.mxu0 %v3369_v5  ;;  %2593 = vmatpush1.bf16.msra.mxu1 %v3373_v6 }
 0x258   :  { %2563 = vmatprep.subr.bf16.mxu0 %v3379_v7  ;;  %2595 = vmatprep.subr.bf16.mxu1 %v3383_v8 }
 0x25b   :  { %2565 = vmatpush1.bf16.msra.mxu0 %v3389_v9  ;;  %2597 = vmatpush1.bf16.msra.mxu1 %v3393_v10 }
 0x25c   :  { %2567 = vmatprep.subr.bf16.mxu0 %v3399_v11  ;;  %2599 = vmatprep.subr.bf16.mxu1 %v3403_v12 }
 0x25f   :  { %2569 = vmatpush1.bf16.msra.mxu0 %v3409_v13  ;;  %2601 = vmatpush1.bf16.msra.mxu1 %v3413_v14 }
 0x260   :  { %2571 = vmatprep.subr.bf16.mxu0 %v3419_v15  ;;  %2603 = vmatprep.subr.bf16.mxu1 %v3423_v16 }
 0x263   :  { %2573 = vmatpush1.bf16.msra.mxu0 %v3429_v17  ;;  %2605 = vmatpush1.bf16.msra.mxu1 %v3433_v18 }
 0x264   :  { %2575 = vmatprep.subr.bf16.mxu0 %v3439_v19  ;;  %2607 = vmatprep.subr.bf16.mxu1 %v3443_v20 }
 0x267   :  { %2577 = vmatpush1.bf16.msra.mxu0 %v3449_v21  ;;  %2609 = vmatpush1.bf16.msra.mxu1 %v3453_v22 }
 0x268   :  { %2579 = vmatprep.subr.bf16.mxu0 %v3459_v24  ;;  %2611 = vmatprep.subr.bf16.mxu1 %v3463_v26 }
 0x26b   :  { %2581 = vmatpush1.bf16.msra.mxu0 %v3469_v29  ;;  %2613 = vmatpush1.bf16.msra.mxu1 %v3473_v32 }
 0x26c   :  { %2615 = vmatprep.subr.bf16.mxu0 %v3324_v58  ;;  %2647 = vmatprep.subr.bf16.mxu1 %v3327_v60 }
 0x321   :  { %v847_v38 = vpop.f32.mrb[4].mxu0  ;;  %v918_v46 = vpop.f32.mrb[4].mxu1 }
 0x322   :  { %v849_v47 = vpop.f32.mrb[5].mxu0  ;;  %v920_v48 = vpop.f32.mrb[5].mxu1 }
 0x323   :  { %v927_v49 = vcombine.low %v847_v38, %v849_v47  ;;  %v928_v50 = vcombine.low %v918_v46, %v920_v48 }
 0x325   :  { %v935_v51 = vrot.slane %v927_v49, %v3515_v41  ;;  %v942_v52 = vrot.slane %v928_v50, %v3515_v41 }
 0x327   :  { %v943_v54 = vcombine.low %v935_v51, %v942_v52 }
 0x329   :  { %v945_v55 = vadd.f32 %v2327_v53, %v943_v54 }
 0x32b   :  { %v2328_v57 = vmul.f32 -1.442695, %v945_v55  ;;  %v953_v63 = vrot.slane %v945_v55, 2  ;;  %v964_v25 = vrot.slane %v945_v55, 6  ;;  %v961_v30 = vrot.slane %v945_v55, 4  ;;  %v2332_v55 = vld [vmem:[%s3807_s0 + $0x18] sm:$0xff] }
 0x32d   :  { %2904 = vpow2.f32 %v2328_v57  ;;  %v2329_v23 = vmul.f32 -1.442695, %v953_v63  ;;  %v2330_v27 = vmul.f32 -1.442695, %v964_v25 }
 0x32f   :  { %2906 = vpow2.f32 %v2329_v23 }
 0x330   :  { %2908 = vpow2.f32 %v2330_v27 }
 0x337   :  { %v2905_v28 = vpop.eup %2904 }
 0x338   :  { %v949_v31 = vadd.f32 1.0, %v2905_v28 }
 0x339   :  { %v2907_v33 = vpop.eup %2906 }
 0x33a   :  { %2910 = vrcp.f32 %v949_v31  ;;  %v958_v34 = vadd.f32 1.0, %v2907_v33  ;;  %v2909_v35 = vpop.eup %2908 }
 0x33b   :  { %2912 = vtanh.f32 %v961_v30  ;;  %v969_v40 = vadd.f32 1.0, %v2909_v35 }
 0x33c   :  { %2914 = vrcp.f32 %v958_v34 }
 0x33d   :  { %2916 = vrcp.f32 %v969_v40 }
 0x344   :  { %v2911_v36 = vpop.eup %2910 }
 0x345   :  { %v2913_v37 = vpop.eup %2912 }
 0x346   :  { %v2915_v39 = vpop.eup %2914  ;;  %v973_v44 = vmul.f32 %v2913_v37, %v2911_v36 }
 0x347   :  { %v972_v43 = vmul.f32 %v2915_v39, %v3568_v42  ;;  %v2917_v38 = vpop.eup %2916 }
 0x349   :  { %v3614_v45 = vadd.f32 %v973_v44, %v972_v43 }
 0x34b   :  { %2918 = vtanh.f32 %v3614_v45 }
 0x355   :  { %v2919_v46 = vpop.eup %2918 }
 0x356   :  { %v976_v47 = vmul.f32 %v2919_v46, %v2917_v38 }
 0x358   :  { %2331 = vst [vmem:[%s3809_s2 + $0x4] sm:$0x3] %v976_v47  ;;  %1110 = vmatmul.mubr.f32.vlgmr.msra.gmra.mrb[6].mxu0 %v976_v47  ;;  %1181 = vmatmul.mubr.f32.vlgmr.msra.gmra.mrb[6].mxu1 %v976_v47 }
 0x359   :  { %2617 = vmatpush1.bf16.msra.mxu0 %v3331_v56  ;;  %2649 = vmatpush1.bf16.msra.mxu1 %v3334_v59 }
 0x35a   :  { %2619 = vmatprep.subr.bf16.mxu0 %v3336_v62  ;;  %2651 = vmatprep.subr.bf16.mxu1 %v3338_v61 }
 0x35b   :  { %1373 = vmatprep.mubr.f32.mxu0 %v3002_v2  ;;  %1444 = vmatprep.mubr.f32.mxu1 %v3002_v2 }
 0x35d   :  { %2621 = vmatpush1.bf16.msra.mxu0 %v3346_v0  ;;  %2653 = vmatpush1.bf16.msra.mxu1 %v3350_v1 }
 0x35e   :  { %2623 = vmatprep.subr.bf16.mxu0 %v3358_v3  ;;  %2655 = vmatprep.subr.bf16.mxu1 %v3361_v4 }
 0x361   :  { %2625 = vmatpush1.bf16.msra.mxu0 %v3369_v5  ;;  %2657 = vmatpush1.bf16.msra.mxu1 %v3373_v6 }
 0x362   :  { %2627 = vmatprep.subr.bf16.mxu0 %v3379_v7  ;;  %2659 = vmatprep.subr.bf16.mxu1 %v3383_v8 }
 0x365   :  { %2629 = vmatpush1.bf16.msra.mxu0 %v3389_v9  ;;  %2661 = vmatpush1.bf16.msra.mxu1 %v3393_v10 }
 0x366   :  { %2631 = vmatprep.subr.bf16.mxu0 %v3399_v11  ;;  %2663 = vmatprep.subr.bf16.mxu1 %v3403_v12 }
 0x369   :  { %2633 = vmatpush1.bf16.msra.mxu0 %v3409_v13  ;;  %2665 = vmatpush1.bf16.msra.mxu1 %v3413_v14 }
 0x36a   :  { %2635 = vmatprep.subr.bf16.mxu0 %v3419_v15  ;;  %2667 = vmatprep.subr.bf16.mxu1 %v3423_v16 }
 0x36d   :  { %2637 = vmatpush1.bf16.msra.mxu0 %v3429_v17  ;;  %2669 = vmatpush1.bf16.msra.mxu1 %v3433_v18 }
 0x36e   :  { %2639 = vmatprep.subr.bf16.mxu0 %v3439_v19  ;;  %2671 = vmatprep.subr.bf16.mxu1 %v3443_v20 }
 0x371   :  { %2641 = vmatpush1.bf16.msra.mxu0 %v3449_v21  ;;  %2673 = vmatpush1.bf16.msra.mxu1 %v3453_v22 }
 0x372   :  { %2643 = vmatprep.subr.bf16.mxu0 %v3459_v24  ;;  %2675 = vmatprep.subr.bf16.mxu1 %v3463_v26 }
 0x375   :  { %2645 = vmatpush1.bf16.msra.mxu0 %v3469_v29  ;;  %2677 = vmatpush1.bf16.msra.mxu1 %v3473_v32 }
 0x376   :  { %2679 = vmatprep.subr.bf16.mxu0 %v3324_v58  ;;  %2711 = vmatprep.subr.bf16.mxu1 %v3327_v60 }
 0x42b   :  { %v1111_v42 = vpop.f32.mrb[6].mxu0  ;;  %v1182_v48 = vpop.f32.mrb[6].mxu1 }
 0x42c   :  { %v1113_v49 = vpop.f32.mrb[7].mxu0  ;;  %v1184_v50 = vpop.f32.mrb[7].mxu1 }
 0x42d   :  { %v1191_v51 = vcombine.low %v1111_v42, %v1113_v49  ;;  %v1192_v52 = vcombine.low %v1182_v48, %v1184_v50 }
 0x42f   :  { %v1199_v53 = vrot.slane %v1191_v51, %v3515_v41  ;;  %v1206_v54 = vrot.slane %v1192_v52, %v3515_v41 }
 0x431   :  { %v1207_v57 = vcombine.low %v1199_v53, %v1206_v54 }
 0x433   :  { %v1209_v63 = vadd.f32 %v2332_v55, %v1207_v57 }
 0x435   :  { %v2333_v23 = vmul.f32 -1.442695, %v1209_v63  ;;  %v1217_v25 = vrot.slane %v1209_v63, 2  ;;  %v1228_v28 = vrot.slane %v1209_v63, 6  ;;  %v1225_v33 = vrot.slane %v1209_v63, 4  ;;  %v2337_v63 = vld [vmem:[%s3807_s0 + $0x20] sm:$0xff] }
 0x437   :  { %2920 = vpow2.f32 %v2333_v23  ;;  %v2334_v27 = vmul.f32 -1.442695, %v1217_v25  ;;  %v2335_v30 = vmul.f32 -1.442695, %v1228_v28 }
 0x439   :  { %2922 = vpow2.f32 %v2334_v27 }
 0x43a   :  { %2924 = vpow2.f32 %v2335_v30 }
 0x441   :  { %v2921_v31 = vpop.eup %2920 }
 0x442   :  { %v1213_v34 = vadd.f32 1.0, %v2921_v31 }
 0x443   :  { %v2923_v35 = vpop.eup %2922 }
 0x444   :  { %2926 = vrcp.f32 %v1213_v34  ;;  %v1222_v36 = vadd.f32 1.0, %v2923_v35  ;;  %v2925_v37 = vpop.eup %2924 }
 0x445   :  { %2928 = vtanh.f32 %v1225_v33  ;;  %v1233_v44 = vadd.f32 1.0, %v2925_v37 }
 0x446   :  { %2930 = vrcp.f32 %v1222_v36 }
 0x447   :  { %2932 = vrcp.f32 %v1233_v44 }
 0x44e   :  { %v2927_v39 = vpop.eup %2926 }
 0x44f   :  { %v2929_v40 = vpop.eup %2928 }
 0x450   :  { %v2931_v43 = vpop.eup %2930  ;;  %v1237_v46 = vmul.f32 %v2929_v40, %v2927_v39 }
 0x451   :  { %v1236_v38 = vmul.f32 %v2931_v43, %v3614_v45  ;;  %v2933_v42 = vpop.eup %2932 }
 0x453   :  { %v3660_v47 = vadd.f32 %v1237_v46, %v1236_v38 }
 0x455   :  { %2934 = vtanh.f32 %v3660_v47 }
 0x45f   :  { %v2935_v48 = vpop.eup %2934 }
 0x460   :  { %v1240_v49 = vmul.f32 %v2935_v48, %v2933_v42 }
 0x462   :  { %2336 = vst [vmem:[%s3809_s2 + $0x6] sm:$0x3] %v1240_v49  ;;  %1374 = vmatmul.mubr.f32.vlgmr.msra.gmra.mrb[8].mxu0 %v1240_v49  ;;  %1445 = vmatmul.mubr.f32.vlgmr.msra.gmra.mrb[8].mxu1 %v1240_v49 }
 0x463   :  { %2681 = vmatpush1.bf16.msra.mxu0 %v3331_v56  ;;  %2713 = vmatpush1.bf16.msra.mxu1 %v3334_v59 }
 0x464   :  { %2683 = vmatprep.subr.bf16.mxu0 %v3336_v62  ;;  %2715 = vmatprep.subr.bf16.mxu1 %v3338_v61 }
 0x465   :  { %1637 = vmatprep.mubr.f32.mxu0 %v3002_v2  ;;  %1708 = vmatprep.mubr.f32.mxu1 %v3002_v2 }
 0x467   :  { %2685 = vmatpush1.bf16.msra.mxu0 %v3346_v0  ;;  %2717 = vmatpush1.bf16.msra.mxu1 %v3350_v1 }
 0x468   :  { %2687 = vmatprep.subr.bf16.mxu0 %v3358_v3  ;;  %2719 = vmatprep.subr.bf16.mxu1 %v3361_v4 }
 0x46b   :  { %2689 = vmatpush1.bf16.msra.mxu0 %v3369_v5  ;;  %2721 = vmatpush1.bf16.msra.mxu1 %v3373_v6 }
 0x46c   :  { %2691 = vmatprep.subr.bf16.mxu0 %v3379_v7  ;;  %2723 = vmatprep.subr.bf16.mxu1 %v3383_v8 }
 0x46f   :  { %2693 = vmatpush1.bf16.msra.mxu0 %v3389_v9  ;;  %2725 = vmatpush1.bf16.msra.mxu1 %v3393_v10 }
 0x470   :  { %2695 = vmatprep.subr.bf16.mxu0 %v3399_v11  ;;  %2727 = vmatprep.subr.bf16.mxu1 %v3403_v12 }
 0x473   :  { %2697 = vmatpush1.bf16.msra.mxu0 %v3409_v13  ;;  %2729 = vmatpush1.bf16.msra.mxu1 %v3413_v14 }
 0x474   :  { %2699 = vmatprep.subr.bf16.mxu0 %v3419_v15  ;;  %2731 = vmatprep.subr.bf16.mxu1 %v3423_v16 }
 0x477   :  { %2701 = vmatpush1.bf16.msra.mxu0 %v3429_v17  ;;  %2733 = vmatpush1.bf16.msra.mxu1 %v3433_v18 }
 0x478   :  { %2703 = vmatprep.subr.bf16.mxu0 %v3439_v19  ;;  %2735 = vmatprep.subr.bf16.mxu1 %v3443_v20 }
 0x47b   :  { %2705 = vmatpush1.bf16.msra.mxu0 %v3449_v21  ;;  %2737 = vmatpush1.bf16.msra.mxu1 %v3453_v22 }
 0x47c   :  { %2707 = vmatprep.subr.bf16.mxu0 %v3459_v24  ;;  %2739 = vmatprep.subr.bf16.mxu1 %v3463_v26 }
 0x47f   :  { %2709 = vmatpush1.bf16.msra.mxu0 %v3469_v29  ;;  %2741 = vmatpush1.bf16.msra.mxu1 %v3473_v32 }
 0x480   :  { %2743 = vmatprep.subr.bf16.mxu0 %v3324_v58  ;;  %2775 = vmatprep.subr.bf16.mxu1 %v3327_v60 }
 0x535   :  { %v1375_v45 = vpop.f32.mrb[8].mxu0  ;;  %v1446_v50 = vpop.f32.mrb[8].mxu1 }
 0x536   :  { %v1377_v51 = vpop.f32.mrb[9].mxu0  ;;  %v1448_v52 = vpop.f32.mrb[9].mxu1 }
 0x537   :  { %v1455_v53 = vcombine.low %v1375_v45, %v1377_v51  ;;  %v1456_v54 = vcombine.low %v1446_v50, %v1448_v52 }
 0x539   :  { %v1463_v55 = vrot.slane %v1455_v53, %v3515_v41  ;;  %v1470_v57 = vrot.slane %v1456_v54, %v3515_v41 }
 0x53b   :  { %v1471_v23 = vcombine.low %v1463_v55, %v1470_v57 }
 0x53d   :  { %v1473_v25 = vadd.f32 %v2337_v63, %v1471_v23 }
 0x53f   :  { %v2338_v27 = vmul.f32 -1.442695, %v1473_v25  ;;  %v1481_v28 = vrot.slane %v1473_v25, 2  ;;  %v1492_v31 = vrot.slane %v1473_v25, 6  ;;  %v1489_v35 = vrot.slane %v1473_v25, 4  ;;  %v2342_v25 = vld [vmem:[%s3807_s0 + $0x28] sm:$0xff] }
 0x541   :  { %2936 = vpow2.f32 %v2338_v27  ;;  %v2339_v30 = vmul.f32 -1.442695, %v1481_v28  ;;  %v2340_v33 = vmul.f32 -1.442695, %v1492_v31 }
 0x543   :  { %2938 = vpow2.f32 %v2339_v30 }
 0x544   :  { %2940 = vpow2.f32 %v2340_v33 }
 0x54b   :  { %v2937_v34 = vpop.eup %2936 }
 0x54c   :  { %v1477_v36 = vadd.f32 1.0, %v2937_v34 }
 0x54d   :  { %v2939_v37 = vpop.eup %2938 }
 0x54e   :  { %2942 = vrcp.f32 %v1477_v36  ;;  %v1486_v39 = vadd.f32 1.0, %v2939_v37  ;;  %v2941_v40 = vpop.eup %2940 }
 0x54f   :  { %2944 = vtanh.f32 %v1489_v35  ;;  %v1497_v46 = vadd.f32 1.0, %v2941_v40 }
 0x550   :  { %2946 = vrcp.f32 %v1486_v39 }
 0x551   :  { %2948 = vrcp.f32 %v1497_v46 }
 0x558   :  { %v2943_v43 = vpop.eup %2942 }
 0x559   :  { %v2945_v44 = vpop.eup %2944 }
 0x55a   :  { %v2947_v38 = vpop.eup %2946  ;;  %v1501_v48 = vmul.f32 %v2945_v44, %v2943_v43 }
 0x55b   :  { %v1500_v42 = vmul.f32 %v2947_v38, %v3660_v47  ;;  %v2949_v45 = vpop.eup %2948 }
 0x55d   :  { %v3706_v49 = vadd.f32 %v1501_v48, %v1500_v42 }
 0x55f   :  { %2950 = vtanh.f32 %v3706_v49 }
 0x569   :  { %v2951_v50 = vpop.eup %2950 }
 0x56a   :  { %v1504_v51 = vmul.f32 %v2951_v50, %v2949_v45 }
 0x56c   :  { %2341 = vst [vmem:[%s3809_s2 + $0x8] sm:$0x3] %v1504_v51  ;;  %1638 = vmatmul.mubr.f32.vlgmr.msra.gmra.mrb[10].mxu0 %v1504_v51  ;;  %1709 = vmatmul.mubr.f32.vlgmr.msra.gmra.mrb[10].mxu1 %v1504_v51 }
 0x56d   :  { %2745 = vmatpush1.bf16.msra.mxu0 %v3331_v56  ;;  %2777 = vmatpush1.bf16.msra.mxu1 %v3334_v59 }
 0x56e   :  { %2747 = vmatprep.subr.bf16.mxu0 %v3336_v62  ;;  %2779 = vmatprep.subr.bf16.mxu1 %v3338_v61 }
 0x56f   :  { %1901 = vmatprep.mubr.f32.mxu0 %v3002_v2  ;;  %1972 = vmatprep.mubr.f32.mxu1 %v3002_v2 }
 0x571   :  { %2749 = vmatpush1.bf16.msra.mxu0 %v3346_v0  ;;  %2781 = vmatpush1.bf16.msra.mxu1 %v3350_v1 }
 0x572   :  { %2751 = vmatprep.subr.bf16.mxu0 %v3358_v3  ;;  %2783 = vmatprep.subr.bf16.mxu1 %v3361_v4 }
 0x575   :  { %2753 = vmatpush1.bf16.msra.mxu0 %v3369_v5  ;;  %2785 = vmatpush1.bf16.msra.mxu1 %v3373_v6 }
 0x576   :  { %2755 = vmatprep.subr.bf16.mxu0 %v3379_v7  ;;  %2787 = vmatprep.subr.bf16.mxu1 %v3383_v8 }
 0x579   :  { %2757 = vmatpush1.bf16.msra.mxu0 %v3389_v9  ;;  %2789 = vmatpush1.bf16.msra.mxu1 %v3393_v10 }
 0x57a   :  { %2759 = vmatprep.subr.bf16.mxu0 %v3399_v11  ;;  %2791 = vmatprep.subr.bf16.mxu1 %v3403_v12 }
 0x57d   :  { %2761 = vmatpush1.bf16.msra.mxu0 %v3409_v13  ;;  %2793 = vmatpush1.bf16.msra.mxu1 %v3413_v14 }
 0x57e   :  { %2763 = vmatprep.subr.bf16.mxu0 %v3419_v15  ;;  %2795 = vmatprep.subr.bf16.mxu1 %v3423_v16 }
 0x581   :  { %2765 = vmatpush1.bf16.msra.mxu0 %v3429_v17  ;;  %2797 = vmatpush1.bf16.msra.mxu1 %v3433_v18 }
 0x582   :  { %2767 = vmatprep.subr.bf16.mxu0 %v3439_v19  ;;  %2799 = vmatprep.subr.bf16.mxu1 %v3443_v20 }
 0x585   :  { %2769 = vmatpush1.bf16.msra.mxu0 %v3449_v21  ;;  %2801 = vmatpush1.bf16.msra.mxu1 %v3453_v22 }
 0x586   :  { %2771 = vmatprep.subr.bf16.mxu0 %v3459_v24  ;;  %2803 = vmatprep.subr.bf16.mxu1 %v3463_v26 }
 0x589   :  { %2773 = vmatpush1.bf16.msra.mxu0 %v3469_v29  ;;  %2805 = vmatpush1.bf16.msra.mxu1 %v3473_v32 }
 0x58a   :  { %2807 = vmatprep.subr.bf16.mxu0 %v3324_v58  ;;  %2839 = vmatprep.subr.bf16.mxu1 %v3327_v60 }
 0x63f   :  { %v1639_v47 = vpop.f32.mrb[10].mxu0  ;;  %v1710_v52 = vpop.f32.mrb[10].mxu1 }
 0x640   :  { %v1641_v53 = vpop.f32.mrb[11].mxu0  ;;  %v1712_v54 = vpop.f32.mrb[11].mxu1 }
 0x641   :  { %v1719_v55 = vcombine.low %v1639_v47, %v1641_v53  ;;  %v1720_v57 = vcombine.low %v1710_v52, %v1712_v54 }
 0x643   :  { %v1727_v63 = vrot.slane %v1719_v55, %v3515_v41  ;;  %v1734_v23 = vrot.slane %v1720_v57, %v3515_v41 }
 0x645   :  { %v1735_v27 = vcombine.low %v1727_v63, %v1734_v23 }
 0x647   :  { %v1737_v28 = vadd.f32 %v2342_v25, %v1735_v27  ;;  %v2352_v27 = vld [vmem:[%s3807_s0 + $0x38] sm:$0xff] }
 0x649   :  { %v2343_v30 = vmul.f32 -1.442695, %v1737_v28  ;;  %v1745_v58 = vrot.slane %v1737_v28, 2  ;;  %v1756_v31 = vrot.slane %v1737_v28, 6  ;;  %v1753_v35 = vrot.slane %v1737_v28, 4 }
 0x64b   :  { %2952 = vpow2.f32 %v2343_v30  ;;  %v2344_v60 = vmul.f32 -1.442695, %v1745_v58  ;;  %v2345_v33 = vmul.f32 -1.442695, %v1756_v31 }
 0x64d   :  { %2954 = vpow2.f32 %v2344_v60 }
 0x64e   :  { %2956 = vpow2.f32 %v2345_v33 }
 0x655   :  { %v2953_v34 = vpop.eup %2952 }
 0x656   :  { %v1741_v36 = vadd.f32 1.0, %v2953_v34 }
 0x657   :  { %v2955_v37 = vpop.eup %2954 }
 0x658   :  { %2958 = vrcp.f32 %v1741_v36  ;;  %v1750_v39 = vadd.f32 1.0, %v2955_v37  ;;  %v2957_v40 = vpop.eup %2956 }
 0x659   :  { %2960 = vtanh.f32 %v1753_v35  ;;  %v1761_v46 = vadd.f32 1.0, %v2957_v40 }
 0x65a   :  { %2962 = vrcp.f32 %v1750_v39 }
 0x65b   :  { %2964 = vrcp.f32 %v1761_v46 }
 0x662   :  { %v2959_v43 = vpop.eup %2958 }
 0x663   :  { %v2961_v44 = vpop.eup %2960 }
 0x664   :  { %v2963_v38 = vpop.eup %2962  ;;  %v1765_v48 = vmul.f32 %v2961_v44, %v2959_v43 }
 0x665   :  { %v1764_v42 = vmul.f32 %v2963_v38, %v3706_v49  ;;  %v2965_v50 = vpop.eup %2964 }
 0x667   :  { %v3752_v45 = vadd.f32 %v1765_v48, %v1764_v42 }
 0x669   :  { %2966 = vtanh.f32 %v3752_v45 }
 0x673   :  { %v2967_v51 = vpop.eup %2966 }
 0x674   :  { %v1768_v47 = vmul.f32 %v2967_v51, %v2965_v50 }
 0x676   :  { %2346 = vst [vmem:[%s3809_s2 + $0xa] sm:$0x3] %v1768_v47  ;;  %1902 = vmatmul.mubr.f32.vlgmr.msra.gmra.mrb[12].mxu0 %v1768_v47  ;;  %1973 = vmatmul.mubr.f32.vlgmr.msra.gmra.mrb[12].mxu1 %v1768_v47 }
 0x677   :  { %2809 = vmatpush1.bf16.msra.mxu0 %v3331_v56  ;;  %2841 = vmatpush1.bf16.msra.mxu1 %v3334_v59 }
 0x678   :  { %2811 = vmatprep.subr.bf16.mxu0 %v3336_v62  ;;  %2843 = vmatprep.subr.bf16.mxu1 %v3338_v61 }
 0x679   :  { %2165 = vmatprep.mubr.f32.mxu0 %v3002_v2  ;;  %2236 = vmatprep.mubr.f32.mxu1 %v3002_v2 }
 0x67b   :  { %2813 = vmatpush1.bf16.msra.mxu0 %v3346_v0  ;;  %2845 = vmatpush1.bf16.msra.mxu1 %v3350_v1 }
 0x67c   :  { %2815 = vmatprep.subr.bf16.mxu0 %v3358_v3  ;;  %2847 = vmatprep.subr.bf16.mxu1 %v3361_v4  ;;  %v2347_v4 = vld [vmem:[%s3807_s0 + $0x30] sm:$0xff] }
 0x67f   :  { %2817 = vmatpush1.bf16.msra.mxu0 %v3369_v5  ;;  %2849 = vmatpush1.bf16.msra.mxu1 %v3373_v6 }
 0x680   :  { %2819 = vmatprep.subr.bf16.mxu0 %v3379_v7  ;;  %2851 = vmatprep.subr.bf16.mxu1 %v3383_v8 }
 0x683   :  { %2821 = vmatpush1.bf16.msra.mxu0 %v3389_v9  ;;  %2853 = vmatpush1.bf16.msra.mxu1 %v3393_v10 }
 0x684   :  { %2823 = vmatprep.subr.bf16.mxu0 %v3399_v11  ;;  %2855 = vmatprep.subr.bf16.mxu1 %v3403_v12 }
 0x687   :  { %2825 = vmatpush1.bf16.msra.mxu0 %v3409_v13  ;;  %2857 = vmatpush1.bf16.msra.mxu1 %v3413_v14 }
 0x688   :  { %2827 = vmatprep.subr.bf16.mxu0 %v3419_v15  ;;  %2859 = vmatprep.subr.bf16.mxu1 %v3423_v16 }
 0x68b   :  { %2829 = vmatpush1.bf16.msra.mxu0 %v3429_v17  ;;  %2861 = vmatpush1.bf16.msra.mxu1 %v3433_v18 }
 0x68c   :  { %2831 = vmatprep.subr.bf16.mxu0 %v3439_v19  ;;  %2863 = vmatprep.subr.bf16.mxu1 %v3443_v20 }
 0x68f   :  { %2833 = vmatpush1.bf16.msra.mxu0 %v3449_v21  ;;  %2865 = vmatpush1.bf16.msra.mxu1 %v3453_v22 }
 0x690   :  { %2835 = vmatprep.subr.bf16.mxu0 %v3459_v24  ;;  %2867 = vmatprep.subr.bf16.mxu1 %v3463_v26 }
 0x693   :  { %2837 = vmatpush1.bf16.msra.mxu0 %v3469_v29  ;;  %2869 = vmatpush1.bf16.msra.mxu1 %v3473_v32 }
 0x749   :  { %v1903_v56 = vpop.f32.mrb[12].mxu0  ;;  %v1974_v59 = vpop.f32.mrb[12].mxu1 }
 0x74a   :  { %v1905_v61 = vpop.f32.mrb[13].mxu0  ;;  %v1976_v62 = vpop.f32.mrb[13].mxu1 }
 0x74b   :  { %v1983_v0 = vcombine.low %v1903_v56, %v1905_v61  ;;  %v1984_v1 = vcombine.low %v1974_v59, %v1976_v62 }
 0x74d   :  { %v1991_v2 = vrot.slane %v1983_v0, %v3515_v41  ;;  %v1998_v3 = vrot.slane %v1984_v1, %v3515_v41 }
 0x74f   :  { %v1999_v5 = vcombine.low %v1991_v2, %v1998_v3 }
 0x751   :  { %v2001_v6 = vadd.f32 %v2347_v4, %v1999_v5 }
 0x753   :  { %v2348_v7 = vmul.f32 -1.442695, %v2001_v6  ;;  %v2009_v8 = vrot.slane %v2001_v6, 2  ;;  %v2020_v10 = vrot.slane %v2001_v6, 6  ;;  %v2017_v13 = vrot.slane %v2001_v6, 4 }
 0x755   :  { %2968 = vpow2.f32 %v2348_v7  ;;  %v2349_v9 = vmul.f32 -1.442695, %v2009_v8  ;;  %v2350_v11 = vmul.f32 -1.442695, %v2020_v10 }
 0x757   :  { %2970 = vpow2.f32 %v2349_v9 }
 0x758   :  { %2972 = vpow2.f32 %v2350_v11 }
 0x75f   :  { %v2969_v12 = vpop.eup %2968 }
 0x760   :  { %v2005_v14 = vadd.f32 1.0, %v2969_v12 }
 0x761   :  { %v2971_v15 = vpop.eup %2970 }
 0x762   :  { %2974 = vrcp.f32 %v2005_v14  ;;  %v2014_v16 = vadd.f32 1.0, %v2971_v15  ;;  %v2973_v17 = vpop.eup %2972 }
 0x763   :  { %2976 = vtanh.f32 %v2017_v13  ;;  %v2025_v21 = vadd.f32 1.0, %v2973_v17 }
 0x764   :  { %2978 = vrcp.f32 %v2014_v16 }
 0x765   :  { %2980 = vrcp.f32 %v2025_v21 }
 0x76c   :  { %v2975_v18 = vpop.eup %2974 }
 0x76d   :  { %v2977_v19 = vpop.eup %2976 }
 0x76e   :  { %v2979_v20 = vpop.eup %2978  ;;  %v2029_v24 = vmul.f32 %v2977_v19, %v2975_v18 }
 0x76f   :  { %v2028_v22 = vmul.f32 %v2979_v20, %v3752_v45  ;;  %v2981_v29 = vpop.eup %2980 }
 0x771   :  { %v2030_v26 = vadd.f32 %v2029_v24, %v2028_v22 }
 0x773   :  { %2982 = vtanh.f32 %v2030_v26 }
 0x77d   :  { %v2983_v32 = vpop.eup %2982 }
 0x77e   :  { %v2032_v49 = vmul.f32 %v2983_v32, %v2981_v29 }
 0x780   :  { %2351 = vst [vmem:[%s3809_s2 + $0xc] sm:$0x3] %v2032_v49  ;;  %2166 = vmatmul.mubr.f32.vlgmr.msra.gmra.mrb[14].mxu0 %v2032_v49  ;;  %2237 = vmatmul.mubr.f32.vlgmr.msra.gmra.mrb[14].mxu1 %v2032_v49 }
 0x853   :  { %v2167_v52 = vpop.f32.mrb[14].mxu0  ;;  %v2238_v53 = vpop.f32.mrb[14].mxu1 }
 0x854   :  { %v2169_v54 = vpop.f32.mrb[15].mxu0  ;;  %v2240_v55 = vpop.f32.mrb[15].mxu1 }
 0x855   :  { %v2247_v57 = vcombine.low %v2167_v52, %v2169_v54  ;;  %v2248_v63 = vcombine.low %v2238_v53, %v2240_v55 }
 0x857   :  { %v2255_v23 = vrot.slane %v2247_v57, %v3515_v41  ;;  %v2262_v25 = vrot.slane %v2248_v63, %v3515_v41 }
 0x859   :  { %v2263_v28 = vcombine.low %v2255_v23, %v2262_v25 }
 0x85b   :  { %v2265_v30 = vadd.f32 %v2352_v27, %v2263_v28 }
 0x85d   :  { %v2353_v58 = vmul.f32 -1.442695, %v2265_v30  ;;  %v2273_v60 = vrot.slane %v2265_v30, 2  ;;  %v2284_v33 = vrot.slane %v2265_v30, 6  ;;  %v2281_v36 = vrot.slane %v2265_v30, 4 }
 0x85f   :  { %2984 = vpow2.f32 %v2353_v58  ;;  %v2354_v31 = vmul.f32 -1.442695, %v2273_v60  ;;  %v2355_v34 = vmul.f32 -1.442695, %v2284_v33 }
 0x861   :  { %2986 = vpow2.f32 %v2354_v31 }
 0x862   :  { %2988 = vpow2.f32 %v2355_v34 }
 0x869   :  { %v2985_v35 = vpop.eup %2984 }
 0x86a   :  { %v2269_v37 = vadd.f32 1.0, %v2985_v35 }
 0x86b   :  { %v2987_v39 = vpop.eup %2986 }
 0x86c   :  { %2990 = vrcp.f32 %v2269_v37  ;;  %v2278_v41 = vadd.f32 1.0, %v2987_v39  ;;  %v2989_v40 = vpop.eup %2988 }
 0x86d   :  { %2992 = vtanh.f32 %v2281_v36  ;;  %v2289_v46 = vadd.f32 1.0, %v2989_v40 }
 0x86e   :  { %2994 = vrcp.f32 %v2278_v41 }
 0x86f   :  { %2996 = vrcp.f32 %v2289_v46 }
 0x876   :  { %v2991_v43 = vpop.eup %2990 }
 0x877   :  { %v2993_v44 = vpop.eup %2992 }
 0x878   :  { %v2995_v38 = vpop.eup %2994  ;;  %v2293_v48 = vmul.f32 %v2993_v44, %v2991_v43 }
 0x879   :  { %v2292_v42 = vmul.f32 %v2995_v38, %v2030_v26  ;;  %v2997_v50 = vpop.eup %2996 }
 0x87b   :  { %v2294_v45 = vadd.f32 %v2293_v48, %v2292_v42 }
 0x87d   :  { %2998 = vtanh.f32 %v2294_v45  ;;  %2300 = vst [vmem:[#allocation3] sm:$0x3] %v2294_v45 }
 0x887   :  { %v2999_v51 = vpop.eup %2998 }
 0x888   :  { %v2296_v47 = vmul.f32 %v2999_v51, %v2997_v50 }
 0x88a   :  { %2356 = vst [vmem:[%s3809_s2 + $0xe] sm:$0x3] %v2296_v47  ;;  %2299 = vst [vmem:[#allocation2] sm:$0x3] %v2296_v47 }
 0x88b   :  { %2305 = vsyncmov [#allocation5] }
 0x88e   :  { %s2306_s26 = vpop.sfrf %2305 }
 0x88f   :  { %p2357_p0 = scmp.ne.s32.totalorder %s2306_s26, 0 }
 0x891   :  { %2310 = shalt.err (%p2357_p0)  }

</bundles_post_ra>
